<compile_context>
chip_gen: v6e
topology: v6e:2x2x1
jax: 0.10.0
libtpu: 0.0.40
codegen_flags: <defaults>
</compile_context>

<pallas_src>
import functools

import jax
import jax.numpy as jnp
from jax.experimental import pallas as pl
from jax.experimental.pallas import tpu as pltpu


# ----------------------------------------------------------------------------
# Fused kernel: conv1+ReLU -> conv2+ReLU -> (flatten) -> fc1+ReLU -> BN -> fc2
#
# In-kernel layouts:
#   x   : (Cin, N*128)  rows = cin, lanes = (n, w) with each sample in its own
#                       zero-padded 128-lane slot (w in [0, 51)).
#   c1  : (8,  N*128)   valid lanes w in [0, 49), rest forced to 0 (gives conv2
#                       its W padding for free).
#   c2  : (16, N*128)   valid lanes w in [0, 49).
#   fc1 : 16 accumulated (N, 56) @ (56, 150) GEMMs, chunk rows w >= 49 are zero.
# ----------------------------------------------------------------------------
def _fused_cnn_kernel(x_ref, w1_ref, b1_ref, w2_ref, b2_ref, w1c_ref, b1e_ref,
                      g_ref, be_ref, w3_ref, b3_ref, o_ref, *,
                      n_batch, slot, w_valid, chunk, eps):
    f32, bf16 = jnp.float32, jnp.bfloat16
    cin = x_ref.shape[0]
    n_ch1 = w2_ref.shape[1] // 3                 # 8 conv1 output channels
    n_ch2 = w2_ref.shape[0]                      # 16 conv2 output channels
    n_hidden = b1e_ref.shape[-1]                 # 150

    # ---- conv1 (kernel (1,3), VALID) + ReLU: one GEMM over tap-concatenated K ----
    xv = x_ref[...].astype(f32)
    z1 = jnp.zeros((cin, 1), f32)
    z2 = jnp.zeros((cin, 2), f32)
    x_cat = jnp.concatenate([
        xv,                                              # x[w]
        jnp.concatenate([xv[:, 1:], z1], axis=1),        # x[w+1]
        jnp.concatenate([xv[:, 2:], z2], axis=1),        # x[w+2]
    ], axis=0)                                           # (3*Cin, N*slot)
    c1 = jnp.dot(w1_ref[...], x_cat.astype(bf16), preferred_element_type=f32)
    c1 = jnp.maximum(c1 + b1_ref[...], 0.0)

    # Zero per-sample lanes w in [49, 128): conv2's W padding + clean sample slots.
    w_lane = jax.lax.broadcasted_iota(jnp.int32, c1.shape, 1) & (slot - 1)
    c1 = jnp.where(w_lane < w_valid, c1, 0.0)

    # ---- conv2 (kernel (1,3), padding=1; real h==1 output row only) + ReLU --------
    # (The constant h==0 / h==2 rows are folded into the fc1 bias at prep time.)
    zl = jnp.zeros((n_ch1, 1), f32)
    c1_cat = jnp.concatenate([
        jnp.concatenate([zl, c1[:, :-1]], axis=1),       # c1[w-1] (left tap, pad col = 0)
        c1,                                              # c1[w]
        jnp.concatenate([c1[:, 1:], zl], axis=1),        # c1[w+1] (right tap, pad col = 0)
    ], axis=0)                                           # (3*8, N*slot)
    c2 = jnp.dot(w2_ref[...], c1_cat.astype(bf16), preferred_element_type=f32)
    c2 = jnp.maximum(c2 + b2_ref[...], 0.0)              # (16, N*slot)

    # ---- flatten + fc1 + ReLU: 16 accumulated per-channel GEMMs ------------------
    # hidden[n, :] = sum_c  c2[c, n*slot : n*slot+chunk] @ w1c[c]   (rows >= 49 are 0)
    hid = jnp.zeros((n_batch, n_hidden), f32)
    for c in range(n_ch2):
        rows = [c2[c:c + 1, n * slot:n * slot + chunk] for n in range(n_batch)]
        blk = jnp.concatenate(rows, axis=0).astype(bf16)             # (N, chunk)
        hid = hid + jnp.dot(blk, w1c_ref[c], preferred_element_type=f32)
    hidden = jnp.maximum(hid + b1e_ref[...], 0.0)

    # ---- BatchNorm1d: training-mode batch statistics (biased variance, eps) ------
    mean = jnp.mean(hidden, axis=0, keepdims=True)
    var = jnp.mean((hidden - mean) ** 2, axis=0, keepdims=True)
    bn = (hidden - mean) * jax.lax.rsqrt(var + eps) * g_ref[...] + be_ref[...]

    # ---- fc2 (logits into a 128-lane padded block) --------------------------------
    logits = jnp.dot(bn.astype(bf16), w3_ref[...], preferred_element_type=f32) + b3_ref[...]
    o_ref[...] = logits.astype(o_ref.dtype)


# ----------------------------------------------------------------------------
# Parameters (PyTorch layout) and one-time, batch-size-independent re-layout
# ----------------------------------------------------------------------------
def init_params(key, in_channels, out_channels, num_classes):
    assert out_channels == 8, "conv2 hardcodes in_channels=8"
    ks = jax.random.split(key, 8)
    scale = 0.05
    return {
        "conv1_w": scale * jax.random.normal(ks[0], (out_channels, in_channels, 1, 3), jnp.float32),
        "conv1_b": scale * jax.random.normal(ks[1], (out_channels,), jnp.float32),
        "conv2_w": scale * jax.random.normal(ks[2], (16, 8, 1, 3), jnp.float32),
        "conv2_b": scale * jax.random.normal(ks[3], (16,), jnp.float32),
        "fc1_w":   scale * jax.random.normal(ks[4], (150, 2352), jnp.float32),   # (out, in)
        # Positive-mean fc1 bias keeps train-mode BatchNorm well conditioned for the
        # bf16-vs-f32 self check (forward semantics are unchanged by the init choice).
        "fc1_b":   0.5 + scale * jax.random.normal(ks[5], (150,), jnp.float32),
        "fc2_w":   scale * jax.random.normal(ks[6], (num_classes, 150), jnp.float32),
        "fc2_b":   scale * jax.random.normal(ks[7], (num_classes,), jnp.float32),
        "bn_gamma": jnp.ones((150,), jnp.float32),
        "bn_beta":  jnp.zeros((150,), jnp.float32),
    }


def prepare_kernel_params(params):
    """One-time re-layout of the PyTorch-style parameters (independent of batch size)."""
    f32, bf16 = jnp.float32, jnp.bfloat16
    w1 = params["conv1_w"].astype(f32)          # (8, Cin, 1, 3)
    w2 = params["conv2_w"].astype(f32)          # (16, 8, 1, 3)
    cout2 = int(w2.shape[0])

    # Conv taps concatenated along the contraction dim, column order (k, cin).
    w1_cat = jnp.concatenate([w1[:, :, 0, k] for k in range(3)], axis=1)   # (8, 3*Cin)
    w2_cat = jnp.concatenate([w2[:, :, 0, k] for k in range(3)], axis=1)   # (16, 24)

    fc1_w = params["fc1_w"].astype(f32)          # (150, 2352)
    n_hidden = int(fc1_w.shape[0])
    w_out = int(fc1_w.shape[1]) // (cout2 * 3)   # 49
    chunk = 56                                   # 49 padded up to a multiple of 8
    fw = fc1_w.reshape(n_hidden, cout2, 3, w_out)
    # Per-channel fc1 chunks (only the h==1 input columns), rows w >= 49 are zero.
    w1_chunks = jnp.transpose(fw[:, :, 1, :], (1, 2, 0))                   # (16, 49, 150)
    w1_chunks = jnp.pad(w1_chunks, ((0, 0), (0, chunk - w_out), (0, 0)))   # (16, 56, 150)
    # Fold the constant h==0 / h==2 feature columns (value relu(conv2_b[c])) into the bias.
    const_cols = fw[:, :, 0, :].sum(-1) + fw[:, :, 2, :].sum(-1)           # (150, 16)
    b1_eff = (params["fc1_b"].astype(f32)
              + const_cols @ jax.nn.relu(params["conv2_b"].astype(f32)))

    num_classes = int(params["fc2_w"].shape[0])
    fc2_wt_pad = jnp.pad(params["fc2_w"].astype(f32).T,
                         ((0, 0), (0, 128 - num_classes)))                 # (150, 128)
    fc2_b_pad = jnp.pad(params["fc2_b"].astype(f32), (0, 128 - num_classes))

    return {
        "w1_cat": w1_cat.astype(bf16),
        "b1_col": params["conv1_b"].astype(f32).reshape(-1, 1),
        "w2_cat": w2_cat.astype(bf16),
        "b2_col": params["conv2_b"].astype(f32).reshape(-1, 1),
        "w1_chunks": w1_chunks.astype(bf16),
        "b1_eff": b1_eff.reshape(1, n_hidden),
        "gamma": params["bn_gamma"].astype(f32).reshape(1, n_hidden),
        "beta": params["bn_beta"].astype(f32).reshape(1, n_hidden),
        "fc2_wt_pad": fc2_wt_pad.astype(bf16),
        "fc2_b_pad": fc2_b_pad.reshape(1, 128),
    }


# ----------------------------------------------------------------------------
# Forward: single fused pallas_call (whole batch in one block, BN needs it)
# ----------------------------------------------------------------------------
@functools.partial(jax.jit, static_argnums=(2,))
def simple_cnn_forward(x, kp, num_classes):
    n, cin, h, w = x.shape
    assert h == 1 and w == 51, "fc1 in-features=2352 implies (H, W) == (1, 51)"
    slot = 128
    n_hidden = kp["b1_eff"].shape[-1]
    chunk = kp["w1_chunks"].shape[1]

    # Activation layout prep (tiny, once per call): (N, Cin, 1, 51) -> (Cin, N*128)
    # with each sample in its own zero-padded 128-lane slot.
    x_l1 = jnp.transpose(x[:, :, 0, :], (1, 0, 2)).astype(jnp.float32)
    x_l1 = jnp.pad(x_l1, ((0, 0), (0, 0), (0, slot - w))).reshape(cin, n * slot)

    kern = functools.partial(_fused_cnn_kernel, n_batch=n, slot=slot,
                             w_valid=49, chunk=chunk, eps=1e-5)
    out = pl.pallas_call(
        kern,
        out_shape=jax.ShapeDtypeStruct((n, 128), jnp.float32),
        grid=(1,),
        in_specs=[
            pl.BlockSpec((cin, n * slot), lambda i: (0, 0)),              # x
            pl.BlockSpec(kp["w1_cat"].shape, lambda i: (0, 0)),           # conv1 taps (8, 3*Cin)
            pl.BlockSpec(kp["b1_col"].shape, lambda i: (0, 0)),           # conv1 bias col
            pl.BlockSpec(kp["w2_cat"].shape, lambda i: (0, 0)),           # conv2 taps (16, 24)
            pl.BlockSpec(kp["b2_col"].shape, lambda i: (0, 0)),           # conv2 bias col
            pl.BlockSpec(kp["w1_chunks"].shape, lambda i: (0, 0, 0)),     # fc1 chunks (16,56,150)
            pl.BlockSpec((1, n_hidden), lambda i: (0, 0)),                # fc1 effective bias
            pl.BlockSpec((1, n_hidden), lambda i: (0, 0)),                # bn gamma
            pl.BlockSpec((1, n_hidden), lambda i: (0, 0)),                # bn beta
            pl.BlockSpec(kp["fc2_wt_pad"].shape, lambda i: (0, 0)),       # fc2 weight (150,128)
            pl.BlockSpec((1, 128), lambda i: (0, 0)),                     # fc2 bias (padded)
        ],
        out_specs=pl.BlockSpec((n, 128), lambda i: (0, 0)),
        compiler_params=pltpu.CompilerParams(dimension_semantics=("arbitrary",)),
    )(x_l1, kp["w1_cat"], kp["b1_col"], kp["w2_cat"], kp["b2_col"],
      kp["w1_chunks"], kp["b1_eff"], kp["gamma"], kp["beta"],
      kp["fc2_wt_pad"], kp["fc2_b_pad"])
    return out[:, :num_classes]


# ----------------------------------------------------------------------------
# Plain-JAX reference (PyTorch semantics, train-mode BatchNorm) for self-check
# ----------------------------------------------------------------------------
def reference_forward(x, params):
    hi = jax.lax.Precision.HIGHEST
    out = jax.lax.conv_general_dilated(
        x, params["conv1_w"], window_strides=(1, 1), padding="VALID",
        dimension_numbers=("NCHW", "OIHW", "NCHW"), precision=hi)
    out = jax.nn.relu(out + params["conv1_b"][None, :, None, None])
    out = jax.lax.conv_general_dilated(
        out, params["conv2_w"], window_strides=(1, 1), padding=[(1, 1), (1, 1)],
        dimension_numbers=("NCHW", "OIHW", "NCHW"), precision=hi)
    out = jax.nn.relu(out + params["conv2_b"][None, :, None, None])
    out = out.reshape(out.shape[0], -1)
    out = jax.nn.relu(jnp.dot(out, params["fc1_w"].T, precision=hi) + params["fc1_b"])
    mean = out.mean(axis=0, keepdims=True)
    var = ((out - mean) ** 2).mean(axis=0, keepdims=True)
    out = (out - mean) / jnp.sqrt(var + 1e-5) * params["bn_gamma"] + params["bn_beta"]
    return jnp.dot(out, params["fc2_w"].T, precision=hi) + params["fc2_b"]


# ----------------------------------------------------------------------------
if __name__ == "__main__":
    key = jax.random.PRNGKey(0)
    k_x, k_p = jax.random.split(key)

    in_channels, out_channels, num_classes = 4, 8, 10   # conv2 requires out_channels == 8
    N, H, W = 8, 1, 51                                  # 16*3*49 = 2352 flattened features

    x = jax.random.normal(k_x, (N, in_channels, H, W), jnp.float32)
    params = init_params(k_p, in_channels, out_channels, num_classes)
    kparams = prepare_kernel_params(params)

    pred = jax.block_until_ready(simple_cnn_forward(x, kparams, num_classes))
    assert pred.shape == (N, num_classes)

    ref = jax.block_until_ready(reference_forward(x, params))
    max_err = float(jnp.max(jnp.abs(pred - ref)))
    assert jnp.allclose(pred, ref, rtol=2e-2, atol=2e-2), f"mismatch, max_err={max_err}"
    print("KERNEL_OK")
</pallas_src>

<mosaic_0001>
module attributes {stable_mosaic.version = 11 : i64} {
  func.func @_fused_cnn_kernel(%arg0: i32, %arg1: memref<4x1024xf32, #tpu.memory_space<vmem>>, %arg2: memref<8x12xbf16, #tpu.memory_space<vmem>>, %arg3: memref<8x1xf32, #tpu.memory_space<vmem>>, %arg4: memref<16x24xbf16, #tpu.memory_space<vmem>>, %arg5: memref<16x1xf32, #tpu.memory_space<vmem>>, %arg6: memref<16x56x150xbf16, #tpu.memory_space<vmem>>, %arg7: memref<1x150xf32, #tpu.memory_space<vmem>>, %arg8: memref<1x150xf32, #tpu.memory_space<vmem>>, %arg9: memref<1x150xf32, #tpu.memory_space<vmem>>, %arg10: memref<150x128xbf16, #tpu.memory_space<vmem>>, %arg11: memref<1x128xf32, #tpu.memory_space<vmem>>, %arg12: memref<8x128xf32, #tpu.memory_space<vmem>>) attributes {dimension_semantics = [#tpu.dimension_semantics<arbitrary>], iteration_bounds = array<i64: 1>, scalar_prefetch = 0 : i64, scratch_operands = 0 : i64, tpu.core_type = #tpu.core_type<tc>, window_params = [{pipeline_mode = #tpu.pipeline_mode<synchronous>, transform_indices = @transform_0, window_bounds = array<i64: 4, 1024>}, {pipeline_mode = #tpu.pipeline_mode<synchronous>, transform_indices = @transform_1, window_bounds = array<i64: 8, 12>}, {pipeline_mode = #tpu.pipeline_mode<synchronous>, transform_indices = @transform_2, window_bounds = array<i64: 8, 1>}, {pipeline_mode = #tpu.pipeline_mode<synchronous>, transform_indices = @transform_3, window_bounds = array<i64: 16, 24>}, {pipeline_mode = #tpu.pipeline_mode<synchronous>, transform_indices = @transform_4, window_bounds = array<i64: 16, 1>}, {pipeline_mode = #tpu.pipeline_mode<synchronous>, transform_indices = @transform_5, window_bounds = array<i64: 16, 56, 150>}, {pipeline_mode = #tpu.pipeline_mode<synchronous>, transform_indices = @transform_6, window_bounds = array<i64: 1, 150>}, {pipeline_mode = #tpu.pipeline_mode<synchronous>, transform_indices = @transform_7, window_bounds = array<i64: 1, 150>}, {pipeline_mode = #tpu.pipeline_mode<synchronous>, transform_indices = @transform_8, window_bounds = array<i64: 1, 150>}, {pipeline_mode = #tpu.pipeline_mode<synchronous>, transform_indices = @transform_9, window_bounds = array<i64: 150, 128>}, {pipeline_mode = #tpu.pipeline_mode<synchronous>, transform_indices = @transform_10, window_bounds = array<i64: 1, 128>}, {pipeline_mode = #tpu.pipeline_mode<synchronous>, transform_indices = @transform_11, window_bounds = array<i64: 8, 128>}]} {
    %c0 = arith.constant 0 : index
    %c0_0 = arith.constant 0 : index
    %0 = vector.load %arg1[%c0, %c0_0] : memref<4x1024xf32, #tpu.memory_space<vmem>>, vector<4x1024xf32>
    %cst = arith.constant 0.000000e+00 : f32
    %1 = vector.broadcast %cst : f32 to vector<4x1xf32>
    %cst_1 = arith.constant 0.000000e+00 : f32
    %2 = vector.broadcast %cst_1 : f32 to vector<4x2xf32>
    %3 = vector.extract_strided_slice %0 {offsets = [0, 1], sizes = [4, 1023], strides = [1, 1]} : vector<4x1024xf32> to vector<4x1023xf32>
    %4 = tpu.concatenate %3, %1 in 1 : vector<4x1023xf32>, vector<4x1xf32> -> vector<4x1024xf32>
    %5 = vector.extract_strided_slice %0 {offsets = [0, 2], sizes = [4, 1022], strides = [1, 1]} : vector<4x1024xf32> to vector<4x1022xf32>
    %6 = tpu.concatenate %5, %2 in 1 : vector<4x1022xf32>, vector<4x2xf32> -> vector<4x1024xf32>
    %7 = tpu.concatenate %0, %4, %6 in 0 : vector<4x1024xf32>, vector<4x1024xf32>, vector<4x1024xf32> -> vector<12x1024xf32>
    %c0_2 = arith.constant 0 : index
    %c0_3 = arith.constant 0 : index
    %8 = vector.load %arg2[%c0_2, %c0_3] : memref<8x12xbf16, #tpu.memory_space<vmem>>, vector<8x12xbf16>
    %9 = arith.truncf %7 : vector<12x1024xf32> to vector<12x1024xbf16>
    %cst_4 = arith.constant dense<0.000000e+00> : vector<8x1024xf32>
    %10 = tpu.matmul %8, %9, %cst_4 {dimension_numbers = #tpu.dot_dimension_numbers<[1], [0], [0], [1], [0, 0, 1, 1], [], []>} : vector<8x12xbf16>, vector<12x1024xbf16>, vector<8x1024xf32> -> vector<8x1024xf32>
    %c0_5 = arith.constant 0 : index
    %c0_6 = arith.constant 0 : index
    %11 = vector.load %arg3[%c0_5, %c0_6] : memref<8x1xf32, #tpu.memory_space<vmem>>, vector<8x1xf32>
    %12 = vector.broadcast %11 : vector<8x1xf32> to vector<8x1024xf32>
    %13 = arith.addf %10, %12 : vector<8x1024xf32>
    %cst_7 = arith.constant 0.000000e+00 : f32
    %14 = vector.broadcast %cst_7 : f32 to vector<8x1024xf32>
    %15 = arith.maximumf %13, %14 : vector<8x1024xf32>
    %16 = tpu.iota {dimensions = array<i32: 1>} : vector<8x1024xi32>
    %c127_i32 = arith.constant 127 : i32
    %17 = vector.broadcast %c127_i32 : i32 to vector<8x1024xi32>
    %18 = arith.andi %16, %17 : vector<8x1024xi32>
    %c49_i32 = arith.constant 49 : i32
    %19 = vector.broadcast %c49_i32 : i32 to vector<8x1024xi32>
    %20 = arith.cmpi slt, %18, %19 : vector<8x1024xi32>
    %cst_8 = arith.constant 0.000000e+00 : f32
    %21 = vector.broadcast %cst_8 : f32 to vector<8x1024xf32>
    %22 = arith.select %20, %15, %21 : vector<8x1024xi1>, vector<8x1024xf32>
    %cst_9 = arith.constant 0.000000e+00 : f32
    %23 = vector.broadcast %cst_9 : f32 to vector<8x1xf32>
    %24 = vector.extract_strided_slice %22 {offsets = [0, 0], sizes = [8, 1023], strides = [1, 1]} : vector<8x1024xf32> to vector<8x1023xf32>
    %25 = tpu.concatenate %23, %24 in 1 : vector<8x1xf32>, vector<8x1023xf32> -> vector<8x1024xf32>
    %26 = vector.extract_strided_slice %22 {offsets = [0, 1], sizes = [8, 1023], strides = [1, 1]} : vector<8x1024xf32> to vector<8x1023xf32>
    %27 = tpu.concatenate %26, %23 in 1 : vector<8x1023xf32>, vector<8x1xf32> -> vector<8x1024xf32>
    %28 = tpu.concatenate %25, %22, %27 in 0 : vector<8x1024xf32>, vector<8x1024xf32>, vector<8x1024xf32> -> vector<24x1024xf32>
    %c0_10 = arith.constant 0 : index
    %c0_11 = arith.constant 0 : index
    %29 = vector.load %arg4[%c0_10, %c0_11] : memref<16x24xbf16, #tpu.memory_space<vmem>>, vector<16x24xbf16>
    %30 = arith.truncf %28 : vector<24x1024xf32> to vector<24x1024xbf16>
    %cst_12 = arith.constant dense<0.000000e+00> : vector<16x1024xf32>
    %31 = tpu.matmul %29, %30, %cst_12 {dimension_numbers = #tpu.dot_dimension_numbers<[1], [0], [0], [1], [0, 0, 1, 1], [], []>} : vector<16x24xbf16>, vector<24x1024xbf16>, vector<16x1024xf32> -> vector<16x1024xf32>
    %c0_13 = arith.constant 0 : index
    %c0_14 = arith.constant 0 : index
    %32 = vector.load %arg5[%c0_13, %c0_14] : memref<16x1xf32, #tpu.memory_space<vmem>>, vector<16x1xf32>
    %33 = vector.broadcast %32 : vector<16x1xf32> to vector<16x1024xf32>
    %34 = arith.addf %31, %33 : vector<16x1024xf32>
    %cst_15 = arith.constant 0.000000e+00 : f32
    %35 = vector.broadcast %cst_15 : f32 to vector<16x1024xf32>
    %36 = arith.maximumf %34, %35 : vector<16x1024xf32>
    %cst_16 = arith.constant 0.000000e+00 : f32
    %37 = vector.broadcast %cst_16 : f32 to vector<8x150xf32>
    %38 = vector.extract_strided_slice %36 {offsets = [0, 0], sizes = [1, 56], strides = [1, 1]} : vector<16x1024xf32> to vector<1x56xf32>
    %39 = vector.extract_strided_slice %36 {offsets = [0, 128], sizes = [1, 56], strides = [1, 1]} : vector<16x1024xf32> to vector<1x56xf32>
    %40 = vector.extract_strided_slice %36 {offsets = [0, 256], sizes = [1, 56], strides = [1, 1]} : vector<16x1024xf32> to vector<1x56xf32>
    %41 = vector.extract_strided_slice %36 {offsets = [0, 384], sizes = [1, 56], strides = [1, 1]} : vector<16x1024xf32> to vector<1x56xf32>
    %42 = vector.extract_strided_slice %36 {offsets = [0, 512], sizes = [1, 56], strides = [1, 1]} : vector<16x1024xf32> to vector<1x56xf32>
    %43 = vector.extract_strided_slice %36 {offsets = [0, 640], sizes = [1, 56], strides = [1, 1]} : vector<16x1024xf32> to vector<1x56xf32>
    %44 = vector.extract_strided_slice %36 {offsets = [0, 768], sizes = [1, 56], strides = [1, 1]} : vector<16x1024xf32> to vector<1x56xf32>
    %45 = vector.extract_strided_slice %36 {offsets = [0, 896], sizes = [1, 56], strides = [1, 1]} : vector<16x1024xf32> to vector<1x56xf32>
    %46 = tpu.concatenate %38, %39, %40, %41, %42, %43, %44, %45 in 0 : vector<1x56xf32>, vector<1x56xf32>, vector<1x56xf32>, vector<1x56xf32>, vector<1x56xf32>, vector<1x56xf32>, vector<1x56xf32>, vector<1x56xf32> -> vector<8x56xf32>
    %47 = arith.truncf %46 : vector<8x56xf32> to vector<8x56xbf16>
    %c0_17 = arith.constant 0 : index
    %c0_18 = arith.constant 0 : index
    %c0_19 = arith.constant 0 : index
    %48 = vector.load %arg6[%c0_17, %c0_18, %c0_19] : memref<16x56x150xbf16, #tpu.memory_space<vmem>>, vector<1x56x150xbf16>
    %49 = vector.shape_cast %48 : vector<1x56x150xbf16> to vector<56x150xbf16>
    %cst_20 = arith.constant dense<0.000000e+00> : vector<8x150xf32>
    %50 = tpu.matmul %47, %49, %cst_20 {dimension_numbers = #tpu.dot_dimension_numbers<[1], [0], [0], [1], [0, 0, 1, 1], [], []>} : vector<8x56xbf16>, vector<56x150xbf16>, vector<8x150xf32> -> vector<8x150xf32>
    %51 = arith.addf %37, %50 : vector<8x150xf32>
    %52 = vector.extract_strided_slice %36 {offsets = [1, 0], sizes = [1, 56], strides = [1, 1]} : vector<16x1024xf32> to vector<1x56xf32>
    %53 = vector.extract_strided_slice %36 {offsets = [1, 128], sizes = [1, 56], strides = [1, 1]} : vector<16x1024xf32> to vector<1x56xf32>
    %54 = vector.extract_strided_slice %36 {offsets = [1, 256], sizes = [1, 56], strides = [1, 1]} : vector<16x1024xf32> to vector<1x56xf32>
    %55 = vector.extract_strided_slice %36 {offsets = [1, 384], sizes = [1, 56], strides = [1, 1]} : vector<16x1024xf32> to vector<1x56xf32>
    %56 = vector.extract_strided_slice %36 {offsets = [1, 512], sizes = [1, 56], strides = [1, 1]} : vector<16x1024xf32> to vector<1x56xf32>
    %57 = vector.extract_strided_slice %36 {offsets = [1, 640], sizes = [1, 56], strides = [1, 1]} : vector<16x1024xf32> to vector<1x56xf32>
    %58 = vector.extract_strided_slice %36 {offsets = [1, 768], sizes = [1, 56], strides = [1, 1]} : vector<16x1024xf32> to vector<1x56xf32>
    %59 = vector.extract_strided_slice %36 {offsets = [1, 896], sizes = [1, 56], strides = [1, 1]} : vector<16x1024xf32> to vector<1x56xf32>
    %60 = tpu.concatenate %52, %53, %54, %55, %56, %57, %58, %59 in 0 : vector<1x56xf32>, vector<1x56xf32>, vector<1x56xf32>, vector<1x56xf32>, vector<1x56xf32>, vector<1x56xf32>, vector<1x56xf32>, vector<1x56xf32> -> vector<8x56xf32>
    %61 = arith.truncf %60 : vector<8x56xf32> to vector<8x56xbf16>
    %c1 = arith.constant 1 : index
    %c0_21 = arith.constant 0 : index
    %c0_22 = arith.constant 0 : index
    %62 = vector.load %arg6[%c1, %c0_21, %c0_22] : memref<16x56x150xbf16, #tpu.memory_space<vmem>>, vector<1x56x150xbf16>
    %63 = vector.shape_cast %62 : vector<1x56x150xbf16> to vector<56x150xbf16>
    %cst_23 = arith.constant dense<0.000000e+00> : vector<8x150xf32>
    %64 = tpu.matmul %61, %63, %cst_23 {dimension_numbers = #tpu.dot_dimension_numbers<[1], [0], [0], [1], [0, 0, 1, 1], [], []>} : vector<8x56xbf16>, vector<56x150xbf16>, vector<8x150xf32> -> vector<8x150xf32>
    %65 = arith.addf %51, %64 : vector<8x150xf32>
    %66 = vector.extract_strided_slice %36 {offsets = [2, 0], sizes = [1, 56], strides = [1, 1]} : vector<16x1024xf32> to vector<1x56xf32>
    %67 = vector.extract_strided_slice %36 {offsets = [2, 128], sizes = [1, 56], strides = [1, 1]} : vector<16x1024xf32> to vector<1x56xf32>
    %68 = vector.extract_strided_slice %36 {offsets = [2, 256], sizes = [1, 56], strides = [1, 1]} : vector<16x1024xf32> to vector<1x56xf32>
    %69 = vector.extract_strided_slice %36 {offsets = [2, 384], sizes = [1, 56], strides = [1, 1]} : vector<16x1024xf32> to vector<1x56xf32>
    %70 = vector.extract_strided_slice %36 {offsets = [2, 512], sizes = [1, 56], strides = [1, 1]} : vector<16x1024xf32> to vector<1x56xf32>
    %71 = vector.extract_strided_slice %36 {offsets = [2, 640], sizes = [1, 56], strides = [1, 1]} : vector<16x1024xf32> to vector<1x56xf32>
    %72 = vector.extract_strided_slice %36 {offsets = [2, 768], sizes = [1, 56], strides = [1, 1]} : vector<16x1024xf32> to vector<1x56xf32>
    %73 = vector.extract_strided_slice %36 {offsets = [2, 896], sizes = [1, 56], strides = [1, 1]} : vector<16x1024xf32> to vector<1x56xf32>
    %74 = tpu.concatenate %66, %67, %68, %69, %70, %71, %72, %73 in 0 : vector<1x56xf32>, vector<1x56xf32>, vector<1x56xf32>, vector<1x56xf32>, vector<1x56xf32>, vector<1x56xf32>, vector<1x56xf32>, vector<1x56xf32> -> vector<8x56xf32>
    %75 = arith.truncf %74 : vector<8x56xf32> to vector<8x56xbf16>
    %c2 = arith.constant 2 : index
    %c0_24 = arith.constant 0 : index
    %c0_25 = arith.constant 0 : index
    %76 = vector.load %arg6[%c2, %c0_24, %c0_25] : memref<16x56x150xbf16, #tpu.memory_space<vmem>>, vector<1x56x150xbf16>
    %77 = vector.shape_cast %76 : vector<1x56x150xbf16> to vector<56x150xbf16>
    %cst_26 = arith.constant dense<0.000000e+00> : vector<8x150xf32>
    %78 = tpu.matmul %75, %77, %cst_26 {dimension_numbers = #tpu.dot_dimension_numbers<[1], [0], [0], [1], [0, 0, 1, 1], [], []>} : vector<8x56xbf16>, vector<56x150xbf16>, vector<8x150xf32> -> vector<8x150xf32>
    %79 = arith.addf %65, %78 : vector<8x150xf32>
    %80 = vector.extract_strided_slice %36 {offsets = [3, 0], sizes = [1, 56], strides = [1, 1]} : vector<16x1024xf32> to vector<1x56xf32>
    %81 = vector.extract_strided_slice %36 {offsets = [3, 128], sizes = [1, 56], strides = [1, 1]} : vector<16x1024xf32> to vector<1x56xf32>
    %82 = vector.extract_strided_slice %36 {offsets = [3, 256], sizes = [1, 56], strides = [1, 1]} : vector<16x1024xf32> to vector<1x56xf32>
    %83 = vector.extract_strided_slice %36 {offsets = [3, 384], sizes = [1, 56], strides = [1, 1]} : vector<16x1024xf32> to vector<1x56xf32>
    %84 = vector.extract_strided_slice %36 {offsets = [3, 512], sizes = [1, 56], strides = [1, 1]} : vector<16x1024xf32> to vector<1x56xf32>
    %85 = vector.extract_strided_slice %36 {offsets = [3, 640], sizes = [1, 56], strides = [1, 1]} : vector<16x1024xf32> to vector<1x56xf32>
    %86 = vector.extract_strided_slice %36 {offsets = [3, 768], sizes = [1, 56], strides = [1, 1]} : vector<16x1024xf32> to vector<1x56xf32>
    %87 = vector.extract_strided_slice %36 {offsets = [3, 896], sizes = [1, 56], strides = [1, 1]} : vector<16x1024xf32> to vector<1x56xf32>
    %88 = tpu.concatenate %80, %81, %82, %83, %84, %85, %86, %87 in 0 : vector<1x56xf32>, vector<1x56xf32>, vector<1x56xf32>, vector<1x56xf32>, vector<1x56xf32>, vector<1x56xf32>, vector<1x56xf32>, vector<1x56xf32> -> vector<8x56xf32>
    %89 = arith.truncf %88 : vector<8x56xf32> to vector<8x56xbf16>
    %c3 = arith.constant 3 : index
    %c0_27 = arith.constant 0 : index
    %c0_28 = arith.constant 0 : index
    %90 = vector.load %arg6[%c3, %c0_27, %c0_28] : memref<16x56x150xbf16, #tpu.memory_space<vmem>>, vector<1x56x150xbf16>
    %91 = vector.shape_cast %90 : vector<1x56x150xbf16> to vector<56x150xbf16>
    %cst_29 = arith.constant dense<0.000000e+00> : vector<8x150xf32>
    %92 = tpu.matmul %89, %91, %cst_29 {dimension_numbers = #tpu.dot_dimension_numbers<[1], [0], [0], [1], [0, 0, 1, 1], [], []>} : vector<8x56xbf16>, vector<56x150xbf16>, vector<8x150xf32> -> vector<8x150xf32>
    %93 = arith.addf %79, %92 : vector<8x150xf32>
    %94 = vector.extract_strided_slice %36 {offsets = [4, 0], sizes = [1, 56], strides = [1, 1]} : vector<16x1024xf32> to vector<1x56xf32>
    %95 = vector.extract_strided_slice %36 {offsets = [4, 128], sizes = [1, 56], strides = [1, 1]} : vector<16x1024xf32> to vector<1x56xf32>
    %96 = vector.extract_strided_slice %36 {offsets = [4, 256], sizes = [1, 56], strides = [1, 1]} : vector<16x1024xf32> to vector<1x56xf32>
    %97 = vector.extract_strided_slice %36 {offsets = [4, 384], sizes = [1, 56], strides = [1, 1]} : vector<16x1024xf32> to vector<1x56xf32>
    %98 = vector.extract_strided_slice %36 {offsets = [4, 512], sizes = [1, 56], strides = [1, 1]} : vector<16x1024xf32> to vector<1x56xf32>
    %99 = vector.extract_strided_slice %36 {offsets = [4, 640], sizes = [1, 56], strides = [1, 1]} : vector<16x1024xf32> to vector<1x56xf32>
    %100 = vector.extract_strided_slice %36 {offsets = [4, 768], sizes = [1, 56], strides = [1, 1]} : vector<16x1024xf32> to vector<1x56xf32>
    %101 = vector.extract_strided_slice %36 {offsets = [4, 896], sizes = [1, 56], strides = [1, 1]} : vector<16x1024xf32> to vector<1x56xf32>
    %102 = tpu.concatenate %94, %95, %96, %97, %98, %99, %100, %101 in 0 : vector<1x56xf32>, vector<1x56xf32>, vector<1x56xf32>, vector<1x56xf32>, vector<1x56xf32>, vector<1x56xf32>, vector<1x56xf32>, vector<1x56xf32> -> vector<8x56xf32>
    %103 = arith.truncf %102 : vector<8x56xf32> to vector<8x56xbf16>
    %c4 = arith.constant 4 : index
    %c0_30 = arith.constant 0 : index
    %c0_31 = arith.constant 0 : index
    %104 = vector.load %arg6[%c4, %c0_30, %c0_31] : memref<16x56x150xbf16, #tpu.memory_space<vmem>>, vector<1x56x150xbf16>
    %105 = vector.shape_cast %104 : vector<1x56x150xbf16> to vector<56x150xbf16>
    %cst_32 = arith.constant dense<0.000000e+00> : vector<8x150xf32>
    %106 = tpu.matmul %103, %105, %cst_32 {dimension_numbers = #tpu.dot_dimension_numbers<[1], [0], [0], [1], [0, 0, 1, 1], [], []>} : vector<8x56xbf16>, vector<56x150xbf16>, vector<8x150xf32> -> vector<8x150xf32>
    %107 = arith.addf %93, %106 : vector<8x150xf32>
    %108 = vector.extract_strided_slice %36 {offsets = [5, 0], sizes = [1, 56], strides = [1, 1]} : vector<16x1024xf32> to vector<1x56xf32>
    %109 = vector.extract_strided_slice %36 {offsets = [5, 128], sizes = [1, 56], strides = [1, 1]} : vector<16x1024xf32> to vector<1x56xf32>
    %110 = vector.extract_strided_slice %36 {offsets = [5, 256], sizes = [1, 56], strides = [1, 1]} : vector<16x1024xf32> to vector<1x56xf32>
    %111 = vector.extract_strided_slice %36 {offsets = [5, 384], sizes = [1, 56], strides = [1, 1]} : vector<16x1024xf32> to vector<1x56xf32>
    %112 = vector.extract_strided_slice %36 {offsets = [5, 512], sizes = [1, 56], strides = [1, 1]} : vector<16x1024xf32> to vector<1x56xf32>
    %113 = vector.extract_strided_slice %36 {offsets = [5, 640], sizes = [1, 56], strides = [1, 1]} : vector<16x1024xf32> to vector<1x56xf32>
    %114 = vector.extract_strided_slice %36 {offsets = [5, 768], sizes = [1, 56], strides = [1, 1]} : vector<16x1024xf32> to vector<1x56xf32>
    %115 = vector.extract_strided_slice %36 {offsets = [5, 896], sizes = [1, 56], strides = [1, 1]} : vector<16x1024xf32> to vector<1x56xf32>
    %116 = tpu.concatenate %108, %109, %110, %111, %112, %113, %114, %115 in 0 : vector<1x56xf32>, vector<1x56xf32>, vector<1x56xf32>, vector<1x56xf32>, vector<1x56xf32>, vector<1x56xf32>, vector<1x56xf32>, vector<1x56xf32> -> vector<8x56xf32>
    %117 = arith.truncf %116 : vector<8x56xf32> to vector<8x56xbf16>
    %c5 = arith.constant 5 : index
    %c0_33 = arith.constant 0 : index
    %c0_34 = arith.constant 0 : index
    %118 = vector.load %arg6[%c5, %c0_33, %c0_34] : memref<16x56x150xbf16, #tpu.memory_space<vmem>>, vector<1x56x150xbf16>
    %119 = vector.shape_cast %118 : vector<1x56x150xbf16> to vector<56x150xbf16>
    %cst_35 = arith.constant dense<0.000000e+00> : vector<8x150xf32>
    %120 = tpu.matmul %117, %119, %cst_35 {dimension_numbers = #tpu.dot_dimension_numbers<[1], [0], [0], [1], [0, 0, 1, 1], [], []>} : vector<8x56xbf16>, vector<56x150xbf16>, vector<8x150xf32> -> vector<8x150xf32>
    %121 = arith.addf %107, %120 : vector<8x150xf32>
    %122 = vector.extract_strided_slice %36 {offsets = [6, 0], sizes = [1, 56], strides = [1, 1]} : vector<16x1024xf32> to vector<1x56xf32>
    %123 = vector.extract_strided_slice %36 {offsets = [6, 128], sizes = [1, 56], strides = [1, 1]} : vector<16x1024xf32> to vector<1x56xf32>
    %124 = vector.extract_strided_slice %36 {offsets = [6, 256], sizes = [1, 56], strides = [1, 1]} : vector<16x1024xf32> to vector<1x56xf32>
    %125 = vector.extract_strided_slice %36 {offsets = [6, 384], sizes = [1, 56], strides = [1, 1]} : vector<16x1024xf32> to vector<1x56xf32>
    %126 = vector.extract_strided_slice %36 {offsets = [6, 512], sizes = [1, 56], strides = [1, 1]} : vector<16x1024xf32> to vector<1x56xf32>
    %127 = vector.extract_strided_slice %36 {offsets = [6, 640], sizes = [1, 56], strides = [1, 1]} : vector<16x1024xf32> to vector<1x56xf32>
    %128 = vector.extract_strided_slice %36 {offsets = [6, 768], sizes = [1, 56], strides = [1, 1]} : vector<16x1024xf32> to vector<1x56xf32>
    %129 = vector.extract_strided_slice %36 {offsets = [6, 896], sizes = [1, 56], strides = [1, 1]} : vector<16x1024xf32> to vector<1x56xf32>
    %130 = tpu.concatenate %122, %123, %124, %125, %126, %127, %128, %129 in 0 : vector<1x56xf32>, vector<1x56xf32>, vector<1x56xf32>, vector<1x56xf32>, vector<1x56xf32>, vector<1x56xf32>, vector<1x56xf32>, vector<1x56xf32> -> vector<8x56xf32>
    %131 = arith.truncf %130 : vector<8x56xf32> to vector<8x56xbf16>
    %c6 = arith.constant 6 : index
    %c0_36 = arith.constant 0 : index
    %c0_37 = arith.constant 0 : index
    %132 = vector.load %arg6[%c6, %c0_36, %c0_37] : memref<16x56x150xbf16, #tpu.memory_space<vmem>>, vector<1x56x150xbf16>
    %133 = vector.shape_cast %132 : vector<1x56x150xbf16> to vector<56x150xbf16>
    %cst_38 = arith.constant dense<0.000000e+00> : vector<8x150xf32>
    %134 = tpu.matmul %131, %133, %cst_38 {dimension_numbers = #tpu.dot_dimension_numbers<[1], [0], [0], [1], [0, 0, 1, 1], [], []>} : vector<8x56xbf16>, vector<56x150xbf16>, vector<8x150xf32> -> vector<8x150xf32>
    %135 = arith.addf %121, %134 : vector<8x150xf32>
    %136 = vector.extract_strided_slice %36 {offsets = [7, 0], sizes = [1, 56], strides = [1, 1]} : vector<16x1024xf32> to vector<1x56xf32>
    %137 = vector.extract_strided_slice %36 {offsets = [7, 128], sizes = [1, 56], strides = [1, 1]} : vector<16x1024xf32> to vector<1x56xf32>
    %138 = vector.extract_strided_slice %36 {offsets = [7, 256], sizes = [1, 56], strides = [1, 1]} : vector<16x1024xf32> to vector<1x56xf32>
    %139 = vector.extract_strided_slice %36 {offsets = [7, 384], sizes = [1, 56], strides = [1, 1]} : vector<16x1024xf32> to vector<1x56xf32>
    %140 = vector.extract_strided_slice %36 {offsets = [7, 512], sizes = [1, 56], strides = [1, 1]} : vector<16x1024xf32> to vector<1x56xf32>
    %141 = vector.extract_strided_slice %36 {offsets = [7, 640], sizes = [1, 56], strides = [1, 1]} : vector<16x1024xf32> to vector<1x56xf32>
    %142 = vector.extract_strided_slice %36 {offsets = [7, 768], sizes = [1, 56], strides = [1, 1]} : vector<16x1024xf32> to vector<1x56xf32>
    %143 = vector.extract_strided_slice %36 {offsets = [7, 896], sizes = [1, 56], strides = [1, 1]} : vector<16x1024xf32> to vector<1x56xf32>
    %144 = tpu.concatenate %136, %137, %138, %139, %140, %141, %142, %143 in 0 : vector<1x56xf32>, vector<1x56xf32>, vector<1x56xf32>, vector<1x56xf32>, vector<1x56xf32>, vector<1x56xf32>, vector<1x56xf32>, vector<1x56xf32> -> vector<8x56xf32>
    %145 = arith.truncf %144 : vector<8x56xf32> to vector<8x56xbf16>
    %c7 = arith.constant 7 : index
    %c0_39 = arith.constant 0 : index
    %c0_40 = arith.constant 0 : index
    %146 = vector.load %arg6[%c7, %c0_39, %c0_40] : memref<16x56x150xbf16, #tpu.memory_space<vmem>>, vector<1x56x150xbf16>
    %147 = vector.shape_cast %146 : vector<1x56x150xbf16> to vector<56x150xbf16>
    %cst_41 = arith.constant dense<0.000000e+00> : vector<8x150xf32>
    %148 = tpu.matmul %145, %147, %cst_41 {dimension_numbers = #tpu.dot_dimension_numbers<[1], [0], [0], [1], [0, 0, 1, 1], [], []>} : vector<8x56xbf16>, vector<56x150xbf16>, vector<8x150xf32> -> vector<8x150xf32>
    %149 = arith.addf %135, %148 : vector<8x150xf32>
    %150 = vector.extract_strided_slice %36 {offsets = [8, 0], sizes = [1, 56], strides = [1, 1]} : vector<16x1024xf32> to vector<1x56xf32>
    %151 = vector.extract_strided_slice %36 {offsets = [8, 128], sizes = [1, 56], strides = [1, 1]} : vector<16x1024xf32> to vector<1x56xf32>
    %152 = vector.extract_strided_slice %36 {offsets = [8, 256], sizes = [1, 56], strides = [1, 1]} : vector<16x1024xf32> to vector<1x56xf32>
    %153 = vector.extract_strided_slice %36 {offsets = [8, 384], sizes = [1, 56], strides = [1, 1]} : vector<16x1024xf32> to vector<1x56xf32>
    %154 = vector.extract_strided_slice %36 {offsets = [8, 512], sizes = [1, 56], strides = [1, 1]} : vector<16x1024xf32> to vector<1x56xf32>
    %155 = vector.extract_strided_slice %36 {offsets = [8, 640], sizes = [1, 56], strides = [1, 1]} : vector<16x1024xf32> to vector<1x56xf32>
    %156 = vector.extract_strided_slice %36 {offsets = [8, 768], sizes = [1, 56], strides = [1, 1]} : vector<16x1024xf32> to vector<1x56xf32>
    %157 = vector.extract_strided_slice %36 {offsets = [8, 896], sizes = [1, 56], strides = [1, 1]} : vector<16x1024xf32> to vector<1x56xf32>
    %158 = tpu.concatenate %150, %151, %152, %153, %154, %155, %156, %157 in 0 : vector<1x56xf32>, vector<1x56xf32>, vector<1x56xf32>, vector<1x56xf32>, vector<1x56xf32>, vector<1x56xf32>, vector<1x56xf32>, vector<1x56xf32> -> vector<8x56xf32>
    %159 = arith.truncf %158 : vector<8x56xf32> to vector<8x56xbf16>
    %c8 = arith.constant 8 : index
    %c0_42 = arith.constant 0 : index
    %c0_43 = arith.constant 0 : index
    %160 = vector.load %arg6[%c8, %c0_42, %c0_43] : memref<16x56x150xbf16, #tpu.memory_space<vmem>>, vector<1x56x150xbf16>
    %161 = vector.shape_cast %160 : vector<1x56x150xbf16> to vector<56x150xbf16>
    %cst_44 = arith.constant dense<0.000000e+00> : vector<8x150xf32>
    %162 = tpu.matmul %159, %161, %cst_44 {dimension_numbers = #tpu.dot_dimension_numbers<[1], [0], [0], [1], [0, 0, 1, 1], [], []>} : vector<8x56xbf16>, vector<56x150xbf16>, vector<8x150xf32> -> vector<8x150xf32>
    %163 = arith.addf %149, %162 : vector<8x150xf32>
    %164 = vector.extract_strided_slice %36 {offsets = [9, 0], sizes = [1, 56], strides = [1, 1]} : vector<16x1024xf32> to vector<1x56xf32>
    %165 = vector.extract_strided_slice %36 {offsets = [9, 128], sizes = [1, 56], strides = [1, 1]} : vector<16x1024xf32> to vector<1x56xf32>
    %166 = vector.extract_strided_slice %36 {offsets = [9, 256], sizes = [1, 56], strides = [1, 1]} : vector<16x1024xf32> to vector<1x56xf32>
    %167 = vector.extract_strided_slice %36 {offsets = [9, 384], sizes = [1, 56], strides = [1, 1]} : vector<16x1024xf32> to vector<1x56xf32>
    %168 = vector.extract_strided_slice %36 {offsets = [9, 512], sizes = [1, 56], strides = [1, 1]} : vector<16x1024xf32> to vector<1x56xf32>
    %169 = vector.extract_strided_slice %36 {offsets = [9, 640], sizes = [1, 56], strides = [1, 1]} : vector<16x1024xf32> to vector<1x56xf32>
    %170 = vector.extract_strided_slice %36 {offsets = [9, 768], sizes = [1, 56], strides = [1, 1]} : vector<16x1024xf32> to vector<1x56xf32>
    %171 = vector.extract_strided_slice %36 {offsets = [9, 896], sizes = [1, 56], strides = [1, 1]} : vector<16x1024xf32> to vector<1x56xf32>
    %172 = tpu.concatenate %164, %165, %166, %167, %168, %169, %170, %171 in 0 : vector<1x56xf32>, vector<1x56xf32>, vector<1x56xf32>, vector<1x56xf32>, vector<1x56xf32>, vector<1x56xf32>, vector<1x56xf32>, vector<1x56xf32> -> vector<8x56xf32>
    %173 = arith.truncf %172 : vector<8x56xf32> to vector<8x56xbf16>
    %c9 = arith.constant 9 : index
    %c0_45 = arith.constant 0 : index
    %c0_46 = arith.constant 0 : index
    %174 = vector.load %arg6[%c9, %c0_45, %c0_46] : memref<16x56x150xbf16, #tpu.memory_space<vmem>>, vector<1x56x150xbf16>
    %175 = vector.shape_cast %174 : vector<1x56x150xbf16> to vector<56x150xbf16>
    %cst_47 = arith.constant dense<0.000000e+00> : vector<8x150xf32>
    %176 = tpu.matmul %173, %175, %cst_47 {dimension_numbers = #tpu.dot_dimension_numbers<[1], [0], [0], [1], [0, 0, 1, 1], [], []>} : vector<8x56xbf16>, vector<56x150xbf16>, vector<8x150xf32> -> vector<8x150xf32>
    %177 = arith.addf %163, %176 : vector<8x150xf32>
    %178 = vector.extract_strided_slice %36 {offsets = [10, 0], sizes = [1, 56], strides = [1, 1]} : vector<16x1024xf32> to vector<1x56xf32>
    %179 = vector.extract_strided_slice %36 {offsets = [10, 128], sizes = [1, 56], strides = [1, 1]} : vector<16x1024xf32> to vector<1x56xf32>
    %180 = vector.extract_strided_slice %36 {offsets = [10, 256], sizes = [1, 56], strides = [1, 1]} : vector<16x1024xf32> to vector<1x56xf32>
    %181 = vector.extract_strided_slice %36 {offsets = [10, 384], sizes = [1, 56], strides = [1, 1]} : vector<16x1024xf32> to vector<1x56xf32>
    %182 = vector.extract_strided_slice %36 {offsets = [10, 512], sizes = [1, 56], strides = [1, 1]} : vector<16x1024xf32> to vector<1x56xf32>
    %183 = vector.extract_strided_slice %36 {offsets = [10, 640], sizes = [1, 56], strides = [1, 1]} : vector<16x1024xf32> to vector<1x56xf32>
    %184 = vector.extract_strided_slice %36 {offsets = [10, 768], sizes = [1, 56], strides = [1, 1]} : vector<16x1024xf32> to vector<1x56xf32>
    %185 = vector.extract_strided_slice %36 {offsets = [10, 896], sizes = [1, 56], strides = [1, 1]} : vector<16x1024xf32> to vector<1x56xf32>
    %186 = tpu.concatenate %178, %179, %180, %181, %182, %183, %184, %185 in 0 : vector<1x56xf32>, vector<1x56xf32>, vector<1x56xf32>, vector<1x56xf32>, vector<1x56xf32>, vector<1x56xf32>, vector<1x56xf32>, vector<1x56xf32> -> vector<8x56xf32>
    %187 = arith.truncf %186 : vector<8x56xf32> to vector<8x56xbf16>
    %c10 = arith.constant 10 : index
    %c0_48 = arith.constant 0 : index
    %c0_49 = arith.constant 0 : index
    %188 = vector.load %arg6[%c10, %c0_48, %c0_49] : memref<16x56x150xbf16, #tpu.memory_space<vmem>>, vector<1x56x150xbf16>
    %189 = vector.shape_cast %188 : vector<1x56x150xbf16> to vector<56x150xbf16>
    %cst_50 = arith.constant dense<0.000000e+00> : vector<8x150xf32>
    %190 = tpu.matmul %187, %189, %cst_50 {dimension_numbers = #tpu.dot_dimension_numbers<[1], [0], [0], [1], [0, 0, 1, 1], [], []>} : vector<8x56xbf16>, vector<56x150xbf16>, vector<8x150xf32> -> vector<8x150xf32>
    %191 = arith.addf %177, %190 : vector<8x150xf32>
    %192 = vector.extract_strided_slice %36 {offsets = [11, 0], sizes = [1, 56], strides = [1, 1]} : vector<16x1024xf32> to vector<1x56xf32>
    %193 = vector.extract_strided_slice %36 {offsets = [11, 128], sizes = [1, 56], strides = [1, 1]} : vector<16x1024xf32> to vector<1x56xf32>
    %194 = vector.extract_strided_slice %36 {offsets = [11, 256], sizes = [1, 56], strides = [1, 1]} : vector<16x1024xf32> to vector<1x56xf32>
    %195 = vector.extract_strided_slice %36 {offsets = [11, 384], sizes = [1, 56], strides = [1, 1]} : vector<16x1024xf32> to vector<1x56xf32>
    %196 = vector.extract_strided_slice %36 {offsets = [11, 512], sizes = [1, 56], strides = [1, 1]} : vector<16x1024xf32> to vector<1x56xf32>
    %197 = vector.extract_strided_slice %36 {offsets = [11, 640], sizes = [1, 56], strides = [1, 1]} : vector<16x1024xf32> to vector<1x56xf32>
    %198 = vector.extract_strided_slice %36 {offsets = [11, 768], sizes = [1, 56], strides = [1, 1]} : vector<16x1024xf32> to vector<1x56xf32>
    %199 = vector.extract_strided_slice %36 {offsets = [11, 896], sizes = [1, 56], strides = [1, 1]} : vector<16x1024xf32> to vector<1x56xf32>
    %200 = tpu.concatenate %192, %193, %194, %195, %196, %197, %198, %199 in 0 : vector<1x56xf32>, vector<1x56xf32>, vector<1x56xf32>, vector<1x56xf32>, vector<1x56xf32>, vector<1x56xf32>, vector<1x56xf32>, vector<1x56xf32> -> vector<8x56xf32>
    %201 = arith.truncf %200 : vector<8x56xf32> to vector<8x56xbf16>
    %c11 = arith.constant 11 : index
    %c0_51 = arith.constant 0 : index
    %c0_52 = arith.constant 0 : index
    %202 = vector.load %arg6[%c11, %c0_51, %c0_52] : memref<16x56x150xbf16, #tpu.memory_space<vmem>>, vector<1x56x150xbf16>
    %203 = vector.shape_cast %202 : vector<1x56x150xbf16> to vector<56x150xbf16>
    %cst_53 = arith.constant dense<0.000000e+00> : vector<8x150xf32>
    %204 = tpu.matmul %201, %203, %cst_53 {dimension_numbers = #tpu.dot_dimension_numbers<[1], [0], [0], [1], [0, 0, 1, 1], [], []>} : vector<8x56xbf16>, vector<56x150xbf16>, vector<8x150xf32> -> vector<8x150xf32>
    %205 = arith.addf %191, %204 : vector<8x150xf32>
    %206 = vector.extract_strided_slice %36 {offsets = [12, 0], sizes = [1, 56], strides = [1, 1]} : vector<16x1024xf32> to vector<1x56xf32>
    %207 = vector.extract_strided_slice %36 {offsets = [12, 128], sizes = [1, 56], strides = [1, 1]} : vector<16x1024xf32> to vector<1x56xf32>
    %208 = vector.extract_strided_slice %36 {offsets = [12, 256], sizes = [1, 56], strides = [1, 1]} : vector<16x1024xf32> to vector<1x56xf32>
    %209 = vector.extract_strided_slice %36 {offsets = [12, 384], sizes = [1, 56], strides = [1, 1]} : vector<16x1024xf32> to vector<1x56xf32>
    %210 = vector.extract_strided_slice %36 {offsets = [12, 512], sizes = [1, 56], strides = [1, 1]} : vector<16x1024xf32> to vector<1x56xf32>
    %211 = vector.extract_strided_slice %36 {offsets = [12, 640], sizes = [1, 56], strides = [1, 1]} : vector<16x1024xf32> to vector<1x56xf32>
    %212 = vector.extract_strided_slice %36 {offsets = [12, 768], sizes = [1, 56], strides = [1, 1]} : vector<16x1024xf32> to vector<1x56xf32>
    %213 = vector.extract_strided_slice %36 {offsets = [12, 896], sizes = [1, 56], strides = [1, 1]} : vector<16x1024xf32> to vector<1x56xf32>
    %214 = tpu.concatenate %206, %207, %208, %209, %210, %211, %212, %213 in 0 : vector<1x56xf32>, vector<1x56xf32>, vector<1x56xf32>, vector<1x56xf32>, vector<1x56xf32>, vector<1x56xf32>, vector<1x56xf32>, vector<1x56xf32> -> vector<8x56xf32>
    %215 = arith.truncf %214 : vector<8x56xf32> to vector<8x56xbf16>
    %c12 = arith.constant 12 : index
    %c0_54 = arith.constant 0 : index
    %c0_55 = arith.constant 0 : index
    %216 = vector.load %arg6[%c12, %c0_54, %c0_55] : memref<16x56x150xbf16, #tpu.memory_space<vmem>>, vector<1x56x150xbf16>
    %217 = vector.shape_cast %216 : vector<1x56x150xbf16> to vector<56x150xbf16>
    %cst_56 = arith.constant dense<0.000000e+00> : vector<8x150xf32>
    %218 = tpu.matmul %215, %217, %cst_56 {dimension_numbers = #tpu.dot_dimension_numbers<[1], [0], [0], [1], [0, 0, 1, 1], [], []>} : vector<8x56xbf16>, vector<56x150xbf16>, vector<8x150xf32> -> vector<8x150xf32>
    %219 = arith.addf %205, %218 : vector<8x150xf32>
    %220 = vector.extract_strided_slice %36 {offsets = [13, 0], sizes = [1, 56], strides = [1, 1]} : vector<16x1024xf32> to vector<1x56xf32>
    %221 = vector.extract_strided_slice %36 {offsets = [13, 128], sizes = [1, 56], strides = [1, 1]} : vector<16x1024xf32> to vector<1x56xf32>
    %222 = vector.extract_strided_slice %36 {offsets = [13, 256], sizes = [1, 56], strides = [1, 1]} : vector<16x1024xf32> to vector<1x56xf32>
    %223 = vector.extract_strided_slice %36 {offsets = [13, 384], sizes = [1, 56], strides = [1, 1]} : vector<16x1024xf32> to vector<1x56xf32>
    %224 = vector.extract_strided_slice %36 {offsets = [13, 512], sizes = [1, 56], strides = [1, 1]} : vector<16x1024xf32> to vector<1x56xf32>
    %225 = vector.extract_strided_slice %36 {offsets = [13, 640], sizes = [1, 56], strides = [1, 1]} : vector<16x1024xf32> to vector<1x56xf32>
    %226 = vector.extract_strided_slice %36 {offsets = [13, 768], sizes = [1, 56], strides = [1, 1]} : vector<16x1024xf32> to vector<1x56xf32>
    %227 = vector.extract_strided_slice %36 {offsets = [13, 896], sizes = [1, 56], strides = [1, 1]} : vector<16x1024xf32> to vector<1x56xf32>
    %228 = tpu.concatenate %220, %221, %222, %223, %224, %225, %226, %227 in 0 : vector<1x56xf32>, vector<1x56xf32>, vector<1x56xf32>, vector<1x56xf32>, vector<1x56xf32>, vector<1x56xf32>, vector<1x56xf32>, vector<1x56xf32> -> vector<8x56xf32>
    %229 = arith.truncf %228 : vector<8x56xf32> to vector<8x56xbf16>
    %c13 = arith.constant 13 : index
    %c0_57 = arith.constant 0 : index
    %c0_58 = arith.constant 0 : index
    %230 = vector.load %arg6[%c13, %c0_57, %c0_58] : memref<16x56x150xbf16, #tpu.memory_space<vmem>>, vector<1x56x150xbf16>
    %231 = vector.shape_cast %230 : vector<1x56x150xbf16> to vector<56x150xbf16>
    %cst_59 = arith.constant dense<0.000000e+00> : vector<8x150xf32>
    %232 = tpu.matmul %229, %231, %cst_59 {dimension_numbers = #tpu.dot_dimension_numbers<[1], [0], [0], [1], [0, 0, 1, 1], [], []>} : vector<8x56xbf16>, vector<56x150xbf16>, vector<8x150xf32> -> vector<8x150xf32>
    %233 = arith.addf %219, %232 : vector<8x150xf32>
    %234 = vector.extract_strided_slice %36 {offsets = [14, 0], sizes = [1, 56], strides = [1, 1]} : vector<16x1024xf32> to vector<1x56xf32>
    %235 = vector.extract_strided_slice %36 {offsets = [14, 128], sizes = [1, 56], strides = [1, 1]} : vector<16x1024xf32> to vector<1x56xf32>
    %236 = vector.extract_strided_slice %36 {offsets = [14, 256], sizes = [1, 56], strides = [1, 1]} : vector<16x1024xf32> to vector<1x56xf32>
    %237 = vector.extract_strided_slice %36 {offsets = [14, 384], sizes = [1, 56], strides = [1, 1]} : vector<16x1024xf32> to vector<1x56xf32>
    %238 = vector.extract_strided_slice %36 {offsets = [14, 512], sizes = [1, 56], strides = [1, 1]} : vector<16x1024xf32> to vector<1x56xf32>
    %239 = vector.extract_strided_slice %36 {offsets = [14, 640], sizes = [1, 56], strides = [1, 1]} : vector<16x1024xf32> to vector<1x56xf32>
    %240 = vector.extract_strided_slice %36 {offsets = [14, 768], sizes = [1, 56], strides = [1, 1]} : vector<16x1024xf32> to vector<1x56xf32>
    %241 = vector.extract_strided_slice %36 {offsets = [14, 896], sizes = [1, 56], strides = [1, 1]} : vector<16x1024xf32> to vector<1x56xf32>
    %242 = tpu.concatenate %234, %235, %236, %237, %238, %239, %240, %241 in 0 : vector<1x56xf32>, vector<1x56xf32>, vector<1x56xf32>, vector<1x56xf32>, vector<1x56xf32>, vector<1x56xf32>, vector<1x56xf32>, vector<1x56xf32> -> vector<8x56xf32>
    %243 = arith.truncf %242 : vector<8x56xf32> to vector<8x56xbf16>
    %c14 = arith.constant 14 : index
    %c0_60 = arith.constant 0 : index
    %c0_61 = arith.constant 0 : index
    %244 = vector.load %arg6[%c14, %c0_60, %c0_61] : memref<16x56x150xbf16, #tpu.memory_space<vmem>>, vector<1x56x150xbf16>
    %245 = vector.shape_cast %244 : vector<1x56x150xbf16> to vector<56x150xbf16>
    %cst_62 = arith.constant dense<0.000000e+00> : vector<8x150xf32>
    %246 = tpu.matmul %243, %245, %cst_62 {dimension_numbers = #tpu.dot_dimension_numbers<[1], [0], [0], [1], [0, 0, 1, 1], [], []>} : vector<8x56xbf16>, vector<56x150xbf16>, vector<8x150xf32> -> vector<8x150xf32>
    %247 = arith.addf %233, %246 : vector<8x150xf32>
    %248 = vector.extract_strided_slice %36 {offsets = [15, 0], sizes = [1, 56], strides = [1, 1]} : vector<16x1024xf32> to vector<1x56xf32>
    %249 = vector.extract_strided_slice %36 {offsets = [15, 128], sizes = [1, 56], strides = [1, 1]} : vector<16x1024xf32> to vector<1x56xf32>
    %250 = vector.extract_strided_slice %36 {offsets = [15, 256], sizes = [1, 56], strides = [1, 1]} : vector<16x1024xf32> to vector<1x56xf32>
    %251 = vector.extract_strided_slice %36 {offsets = [15, 384], sizes = [1, 56], strides = [1, 1]} : vector<16x1024xf32> to vector<1x56xf32>
    %252 = vector.extract_strided_slice %36 {offsets = [15, 512], sizes = [1, 56], strides = [1, 1]} : vector<16x1024xf32> to vector<1x56xf32>
    %253 = vector.extract_strided_slice %36 {offsets = [15, 640], sizes = [1, 56], strides = [1, 1]} : vector<16x1024xf32> to vector<1x56xf32>
    %254 = vector.extract_strided_slice %36 {offsets = [15, 768], sizes = [1, 56], strides = [1, 1]} : vector<16x1024xf32> to vector<1x56xf32>
    %255 = vector.extract_strided_slice %36 {offsets = [15, 896], sizes = [1, 56], strides = [1, 1]} : vector<16x1024xf32> to vector<1x56xf32>
    %256 = tpu.concatenate %248, %249, %250, %251, %252, %253, %254, %255 in 0 : vector<1x56xf32>, vector<1x56xf32>, vector<1x56xf32>, vector<1x56xf32>, vector<1x56xf32>, vector<1x56xf32>, vector<1x56xf32>, vector<1x56xf32> -> vector<8x56xf32>
    %257 = arith.truncf %256 : vector<8x56xf32> to vector<8x56xbf16>
    %c15 = arith.constant 15 : index
    %c0_63 = arith.constant 0 : index
    %c0_64 = arith.constant 0 : index
    %258 = vector.load %arg6[%c15, %c0_63, %c0_64] : memref<16x56x150xbf16, #tpu.memory_space<vmem>>, vector<1x56x150xbf16>
    %259 = vector.shape_cast %258 : vector<1x56x150xbf16> to vector<56x150xbf16>
    %cst_65 = arith.constant dense<0.000000e+00> : vector<8x150xf32>
    %260 = tpu.matmul %257, %259, %cst_65 {dimension_numbers = #tpu.dot_dimension_numbers<[1], [0], [0], [1], [0, 0, 1, 1], [], []>} : vector<8x56xbf16>, vector<56x150xbf16>, vector<8x150xf32> -> vector<8x150xf32>
    %261 = arith.addf %247, %260 : vector<8x150xf32>
    %c0_66 = arith.constant 0 : index
    %c0_67 = arith.constant 0 : index
    %262 = vector.load %arg7[%c0_66, %c0_67] : memref<1x150xf32, #tpu.memory_space<vmem>>, vector<1x150xf32>
    %263 = vector.broadcast %262 : vector<1x150xf32> to vector<8x150xf32>
    %264 = arith.addf %261, %263 : vector<8x150xf32>
    %cst_68 = arith.constant 0.000000e+00 : f32
    %265 = vector.broadcast %cst_68 : f32 to vector<8x150xf32>
    %266 = arith.maximumf %264, %265 : vector<8x150xf32>
    %cst_69 = arith.constant dense<0.000000e+00> : vector<150xf32>
    %267 = vector.multi_reduction <add>, %266, %cst_69 [0] : vector<8x150xf32> to vector<150xf32>
    %268 = vector.shape_cast %267 : vector<150xf32> to vector<1x150xf32>
    %cst_70 = arith.constant 8.000000e+00 : f32
    %269 = vector.broadcast %cst_70 : f32 to vector<1x150xf32>
    %270 = arith.divf %268, %269 : vector<1x150xf32>
    %271 = vector.broadcast %270 : vector<1x150xf32> to vector<8x150xf32>
    %272 = arith.subf %266, %271 : vector<8x150xf32>
    %273 = arith.mulf %272, %272 : vector<8x150xf32>
    %cst_71 = arith.constant dense<0.000000e+00> : vector<150xf32>
    %274 = vector.multi_reduction <add>, %273, %cst_71 [0] : vector<8x150xf32> to vector<150xf32>
    %275 = vector.shape_cast %274 : vector<150xf32> to vector<1x150xf32>
    %cst_72 = arith.constant 8.000000e+00 : f32
    %276 = vector.broadcast %cst_72 : f32 to vector<1x150xf32>
    %277 = arith.divf %275, %276 : vector<1x150xf32>
    %278 = vector.broadcast %270 : vector<1x150xf32> to vector<8x150xf32>
    %279 = arith.subf %266, %278 : vector<8x150xf32>
    %cst_73 = arith.constant 9.99999974E-6 : f32
    %280 = vector.broadcast %cst_73 : f32 to vector<1x150xf32>
    %281 = arith.addf %277, %280 : vector<1x150xf32>
    %282 = math.rsqrt %281 : vector<1x150xf32>
    %283 = vector.broadcast %282 : vector<1x150xf32> to vector<8x150xf32>
    %284 = arith.mulf %279, %283 : vector<8x150xf32>
    %c0_74 = arith.constant 0 : index
    %c0_75 = arith.constant 0 : index
    %285 = vector.load %arg8[%c0_74, %c0_75] : memref<1x150xf32, #tpu.memory_space<vmem>>, vector<1x150xf32>
    %286 = vector.broadcast %285 : vector<1x150xf32> to vector<8x150xf32>
    %287 = arith.mulf %284, %286 : vector<8x150xf32>
    %c0_76 = arith.constant 0 : index
    %c0_77 = arith.constant 0 : index
    %288 = vector.load %arg9[%c0_76, %c0_77] : memref<1x150xf32, #tpu.memory_space<vmem>>, vector<1x150xf32>
    %289 = vector.broadcast %288 : vector<1x150xf32> to vector<8x150xf32>
    %290 = arith.addf %287, %289 : vector<8x150xf32>
    %291 = arith.truncf %290 : vector<8x150xf32> to vector<8x150xbf16>
    %c0_78 = arith.constant 0 : index
    %c0_79 = arith.constant 0 : index
    %292 = vector.load %arg10[%c0_78, %c0_79] : memref<150x128xbf16, #tpu.memory_space<vmem>>, vector<150x128xbf16>
    %cst_80 = arith.constant dense<0.000000e+00> : vector<8x128xf32>
    %293 = tpu.matmul %291, %292, %cst_80 {dimension_numbers = #tpu.dot_dimension_numbers<[1], [0], [0], [1], [0, 0, 1, 1], [], []>} : vector<8x150xbf16>, vector<150x128xbf16>, vector<8x128xf32> -> vector<8x128xf32>
    %c0_81 = arith.constant 0 : index
    %c0_82 = arith.constant 0 : index
    %294 = vector.load %arg11[%c0_81, %c0_82] : memref<1x128xf32, #tpu.memory_space<vmem>>, vector<1x128xf32>
    %295 = vector.broadcast %294 : vector<1x128xf32> to vector<8x128xf32>
    %296 = arith.addf %293, %295 : vector<8x128xf32>
    %c0_83 = arith.constant 0 : index
    %c0_84 = arith.constant 0 : index
    %297 = vector.load %arg12[%c0_83, %c0_84] : memref<8x128xf32, #tpu.memory_space<vmem>>, vector<8x128xf32>
    tpu.vector_store %arg12[%c0_83, %c0_84], %296 {strides = array<i32>} : memref<8x128xf32, #tpu.memory_space<vmem>>, vector<8x128xf32>,
    return
  }
  func.func @transform_0(%arg0: i32) -> (i32, i32) {
    %c0_i32 = arith.constant 0 : i32
    %c0_i32_0 = arith.constant 0 : i32
    %c0_i32_1 = arith.constant 0 : i32
    return %c0_i32, %c0_i32_0 : i32, i32
  }
  func.func @transform_1(%arg0: i32) -> (i32, i32) {
    %c0_i32 = arith.constant 0 : i32
    %c0_i32_0 = arith.constant 0 : i32
    %c0_i32_1 = arith.constant 0 : i32
    return %c0_i32, %c0_i32_0 : i32, i32
  }
  func.func @transform_2(%arg0: i32) -> (i32, i32) {
    %c0_i32 = arith.constant 0 : i32
    %c0_i32_0 = arith.constant 0 : i32
    %c0_i32_1 = arith.constant 0 : i32
    return %c0_i32, %c0_i32_0 : i32, i32
  }
  func.func @transform_3(%arg0: i32) -> (i32, i32) {
    %c0_i32 = arith.constant 0 : i32
    %c0_i32_0 = arith.constant 0 : i32
    %c0_i32_1 = arith.constant 0 : i32
    return %c0_i32, %c0_i32_0 : i32, i32
  }
  func.func @transform_4(%arg0: i32) -> (i32, i32) {
    %c0_i32 = arith.constant 0 : i32
    %c0_i32_0 = arith.constant 0 : i32
    %c0_i32_1 = arith.constant 0 : i32
    return %c0_i32, %c0_i32_0 : i32, i32
  }
  func.func @transform_5(%arg0: i32) -> (i32, i32, i32) {
    %c0_i32 = arith.constant 0 : i32
    %c0_i32_0 = arith.constant 0 : i32
    %c0_i32_1 = arith.constant 0 : i32
    %c0_i32_2 = arith.constant 0 : i32
    return %c0_i32, %c0_i32_0, %c0_i32_1 : i32, i32, i32
  }
  func.func @transform_6(%arg0: i32) -> (i32, i32) {
    %c0_i32 = arith.constant 0 : i32
    %c0_i32_0 = arith.constant 0 : i32
    %c0_i32_1 = arith.constant 0 : i32
    return %c0_i32, %c0_i32_0 : i32, i32
  }
  func.func @transform_7(%arg0: i32) -> (i32, i32) {
    %c0_i32 = arith.constant 0 : i32
    %c0_i32_0 = arith.constant 0 : i32
    %c0_i32_1 = arith.constant 0 : i32
    return %c0_i32, %c0_i32_0 : i32, i32
  }
  func.func @transform_8(%arg0: i32) -> (i32, i32) {
    %c0_i32 = arith.constant 0 : i32
    %c0_i32_0 = arith.constant 0 : i32
    %c0_i32_1 = arith.constant 0 : i32
    return %c0_i32, %c0_i32_0 : i32, i32
  }
  func.func @transform_9(%arg0: i32) -> (i32, i32) {
    %c0_i32 = arith.constant 0 : i32
    %c0_i32_0 = arith.constant 0 : i32
    %c0_i32_1 = arith.constant 0 : i32
    return %c0_i32, %c0_i32_0 : i32, i32
  }
  func.func @transform_10(%arg0: i32) -> (i32, i32) {
    %c0_i32 = arith.constant 0 : i32
    %c0_i32_0 = arith.constant 0 : i32
    %c0_i32_1 = arith.constant 0 : i32
    return %c0_i32, %c0_i32_0 : i32, i32
  }
  func.func @transform_11(%arg0: i32) -> (i32, i32) {
    %c0_i32 = arith.constant 0 : i32
    %c0_i32_0 = arith.constant 0 : i32
    %c0_i32_1 = arith.constant 0 : i32
    return %c0_i32, %c0_i32_0 : i32, i32
  }
}

</mosaic_0001>

<bundles_post_ra>
// kernel: simple_cnn_forward.1
= control target key start
LH: loop header
LB: loop body
LE: loop exit
PB: predicated region body
PF: predicated region fallthrough
CT: control target
= control target key end

     0   :  { %16 = vsyncpa [#allocation3], 0  ;;  %s4335_s0 = inlined_call_operand.vmem [shape: f32[4,1024], index: 0, kind: input, shape index: {}]   ;;  %s4336_s1 = inlined_call_operand.vmem [shape: bf16[8,12], index: 1, kind: input, shape index: {}]   ;;  %s4337_s2 = inlined_call_operand.vmem [shape: f32[8,1], index: 2, kind: input, shape index: {}]   ;;  %s4338_s3 = inlined_call_operand.vmem [shape: bf16[16,24], index: 3, kind: input, shape index: {}]   ;;  %s4339_s4 = inlined_call_operand.vmem [shape: f32[16,1], index: 4, kind: input, shape index: {}]   ;;  %s4340_s5 = inlined_call_operand.hbm [shape: bf16[16,56,150], index: 5, kind: input, shape index: {}]   ;;  %s4341_s6 = inlined_call_operand.vmem [shape: f32[1,150], index: 6, kind: input, shape index: {}]   ;;  %s4342_s7 = inlined_call_operand.vmem [shape: f32[1,150], index: 7, kind: input, shape index: {}]   ;;  %s4343_s8 = inlined_call_operand.vmem [shape: f32[1,150], index: 8, kind: input, shape index: {}]   ;;  %s4344_s9 = inlined_call_operand.vmem [shape: bf16[150,128], index: 9, kind: input, shape index: {}]   ;;  %s4345_s10 = inlined_call_operand.vmem [shape: f32[1,128], index: 10, kind: input, shape index: {}]   ;;  %s4346_s11 = inlined_call_operand.hbm [shape: f32[8,128], index: 11, kind: output, shape index: {}]  }
   0x1   :  { %17 = vsyncpa [#allocation4], 0  ;;  %s3384_s17 = smov [#allocation2]  }
   0x2   :  { %s33_s18 = sshll.u32 %s3384_s17, 4  ;;  %s34_s18 = int_to_ptr.vmem [resolvable:$true] %s33_s18 }
   0x3   :  { %s3348_s19 = scalar_lea.vmem %s34_s18, 14336  ;;  %p3353_p1 = scmp.lt.s32.totalorder %s34_s18, %s34_s18 }
   0x4   :  { %p3349_p0 = scmp.ne.s32.totalorder %s34_s18, %s3348_s19  ;;  %p3354_p2 = scmp.lt.s32.totalorder %s3348_s19, %s3348_s19 }
   0x6   :  { %p3355_p3 = por %p3354_p2, %p3353_p1 }
   0x8   :  { %p3356_p4 = pnand %p3355_p3, %p3349_p0 }
   0xa   :  { %3359 = shalt.err (!%p3356_p4)
}
   0xb   :  { %s3385_s20 = smov 128   ;;  %s3386_s21 = smov 8  }
   0xc   :  { %39 = dma.hbm_to_vmem [thread:$0]  %s4340_s5, 14336, %s34_s18, [#allocation3], %s3385_s20, %s3385_s20, %s3386_s21  }
   0xd   :  { %3380 = dma.done.wait [#allocation3], 14336  }
   0xe   :  { %3381 = vsyncadd [#allocation3], 4294952960  ;;  %v3459_v0 = vld [vmem:[%s4335_s0 + $0x8] sm:$0xff]  ;;  %v54_v1 = vld [vmem:[%s4335_s0] sm:$0xff]  ;;  %s3387_s28 = smov 126   ;;  %s3388_s13 = smov 127  }
   0xf   :  { %96 = vrot.lane.b32.xlu1 %v3459_v0, %s3387_s28  ;;  %v3467_v2 = vcombine.high %v3459_v0, %v3459_v0  ;;  %v62_v3 = vcombine.high %v54_v1, %v54_v1  ;;  %v3472_v4 = vld [vmem:[%s4335_s0 + $0x10] sm:$0xff]  ;;  %v3477_v6 = vld [vmem:[%s4335_s0 + $0x18] sm:$0xff]  ;;  %v3389_v9 = vmov 0   ;;  %v164_v14 = vld [vmem:[%s4337_s2] sm:$0xff]  ;;  %vm82_vm0 = vcmask 1039360  }
  0x10   :  { %v3484_v8 = vcombine.high %v3472_v4, %v3472_v4  ;;  %231 = vmatprep.mubr.bf16.mxu0 %v3389_v9  ;;  %272 = vmatprep.mubr.bf16.mxu1 %v3389_v9  ;;  %v3502_v13 = vcombine.high %v3477_v6, %v3477_v6  ;;  %vm146_vm1 = vcmask 1043456   ;;  %vm108_vm2 = vcmask 1031168   ;;  %v155_v61 = vld [vmem:[%s4336_s1] sm:$0xf]  ;;  %s3390_s1 = smov 1  }
  0x11   :  { %v3083_v5 = vpack.i.bf16 %v62_v3, %v54_v1  ;;  %v3078_v7 = vpack.i.bf16 %v3467_v2, %v3459_v0  ;;  %3103 = vset.pattern.permute.xlu0 %v3389_v9  ;;  %3144 = vset.pattern.permute.xlu1 %v3389_v9  ;;  %v3093_v12 = vpack.i.bf16 %v3472_v4, %v3467_v2  ;;  %vm174_vm3 = vcmask 1045504  }
  0x12   :  { %v3088_v10 = vpack.i.bf16 %v3484_v8, %v3472_v4  ;;  %v3098_v11 = vpack.i.bf16 %v3477_v6, %v3484_v8  ;;  %vm170_vm4 = vcmask 97280   ;;  %vm428_vm13 = vcmask 7168  }
  0x13   :  { %3084 = vrot.lane.b32.xlu1 %v3083_v5, %s3387_s28  ;;  %3074 = vrot.lane.b32.xlu0 %v3083_v5, %s3388_s13  ;;  %vm3668_vm14 = vmneg %vm428_vm13  ;;  %vm3391_vm15 = vmmov 1  }
  0x17   :  { %3079 = vrot.lane.b32.xlu0 %v3078_v7, %s3388_s13  ;;  %78 = vrot.lane.b32.xlu1 %v3477_v6, %s3388_s13 }
  0x1b   :  { %3089 = vrot.lane.b32.xlu0 %v3088_v10, %s3388_s13  ;;  %3099 = vrot.lane.b32.xlu1 %v3098_v11, %s3387_s28 }
  0x1f   :  { %3094 = vrot.lane.b32.xlu0 %v3093_v12, %s3387_s28  ;;  %106 = vrot.lane.b32.xlu1 %v3502_v13, %s3387_s28 }
  0x23   :  { %80 = vrot.lane.b32.xlu0 %v3502_v13, %s3388_s13 }
  0x27   :  { %167 = vperm.xlu0 %3103, %v164_v14  }
  0x81   :  { %v97_v15 = vpop.permute.xlu1 %96 }
  0x85   :  { %v3085_v16 = vpop.permute.xlu1 %3084  ;;  %v3075_v17 = vpop.permute.xlu0 %3074 }
  0x86   :  { %v3086_v18 = vunpack.i.l.bf16 %v3085_v16  ;;  %v3077_v19 = vunpack.i.h.bf16 %v3075_v17  ;;  %v3076_v20 = vunpack.i.l.bf16 %v3075_v17  ;;  %v3087_v21 = vunpack.i.h.bf16 %v3085_v16 }
  0x88   :  { %v83_v22 = vsel %vm82_vm0, %v3076_v20, %v3077_v19  ;;  %v109_v28 = vsel %vm108_vm2, %v3086_v18, %v3087_v21  ;;  %v110_v41 = vsel %vm108_vm2, %v3087_v21, %v97_v15 }
  0x89   :  { %v130_v23 = vrot.slane %v83_v22, 4  ;;  %v3080_v24 = vpop.permute.xlu0 %3079  ;;  %v79_v25 = vpop.permute.xlu1 %78 }
  0x8a   :  { %v3082_v26 = vunpack.i.h.bf16 %v3080_v24  ;;  %v3081_v27 = vunpack.i.l.bf16 %v3080_v24 }
  0x8b   :  { %v147_v29 = vsel %vm146_vm1, %v54_v1, %v130_v23 }
  0x8c   :  { %v84_v30 = vsel %vm82_vm0, %v3077_v19, %v3081_v27  ;;  %v85_v31 = vsel %vm82_vm0, %v3081_v27, %v3082_v26  ;;  %v156_v35 = vpack.c.bf16 %v109_v28, %v147_v29 }
  0x8d   :  { %v131_v32 = vrot.slane %v84_v30, 4  ;;  %v3090_v33 = vpop.permute.xlu0 %3089  ;;  %v3100_v34 = vpop.permute.xlu1 %3099  ;;  %v132_v40 = vrot.slane %v85_v31, 4 }
  0x8e   :  { %v3092_v36 = vunpack.i.h.bf16 %v3090_v33  ;;  %v3091_v37 = vunpack.i.l.bf16 %v3090_v33  ;;  %v3102_v38 = vunpack.i.h.bf16 %v3100_v34  ;;  %v3101_v39 = vunpack.i.l.bf16 %v3100_v34 }
  0x8f   :  { %v148_v42 = vsel %vm146_vm1, %v62_v3, %v131_v32  ;;  %v176_v54 = vsel %vm174_vm3, %v156_v35, 0  ;;  %v149_v57 = vsel %vm146_vm1, %v3459_v0, %v132_v40 }
  0x90   :  { %v88_v43 = vsel %vm82_vm0, %v3092_v36, %v79_v25  ;;  %v86_v44 = vsel %vm82_vm0, %v3082_v26, %v3091_v37  ;;  %v87_v45 = vsel %vm82_vm0, %v3091_v37, %v3092_v36  ;;  %v114_v46 = vsel %vm108_vm2, %v3101_v39, %v3102_v38 }
  0x91   :  { %v135_v47 = vrot.slane %v88_v43, 4  ;;  %v133_v48 = vrot.slane %v86_v44, 4  ;;  %v134_v49 = vrot.slane %v87_v45, 4  ;;  %v3095_v50 = vpop.permute.xlu0 %3094  ;;  %v157_v51 = vpack.c.bf16 %v110_v41, %v148_v42  ;;  %v107_v1 = vpop.permute.xlu1 %106 }
  0x92   :  { %v3097_v52 = vunpack.i.h.bf16 %v3095_v50  ;;  %v3096_v53 = vunpack.i.l.bf16 %v3095_v50  ;;  %v124_v7 = vsel %vm108_vm2, %v107_v1, 0.0 }
  0x93   :  { %v152_v55 = vsel %vm146_vm1, %v3484_v8, %v135_v47  ;;  %2850 = vmatprep.subr.msk.bf16.mxu0 %vm174_vm3, %v157_v51  ;;  %v150_v56 = vsel %vm146_vm1, %v3467_v2, %v133_v48  ;;  %v151_v58 = vsel %vm146_vm1, %v3472_v4, %v134_v49 }
  0x94   :  { %v161_v59 = vpack.c.bf16 %v114_v46, %v152_v55  ;;  %v113_v60 = vsel %vm108_vm2, %v3097_v52, %v3101_v39  ;;  %214 = vmatpush1.bf16.msra.mxu0 %v176_v54  ;;  %v112_v62 = vsel %vm108_vm2, %v3096_v53, %v3097_v52  ;;  %v111_v63 = vsel %vm108_vm2, %v97_v15, %v3096_v53 }
  0x95   :  { %v81_v2 = vpop.permute.xlu0 %80  ;;  %v159_v3 = vpack.c.bf16 %v112_v62, %v150_v56  ;;  %v158_v5 = vpack.c.bf16 %v111_v63, %v149_v57  ;;  %v160_v0 = vpack.c.bf16 %v113_v60, %v151_v58  ;;  %v115_v15 = vsel %vm108_vm2, %v3102_v38, %v107_v1 }
  0x96   :  { %v89_v4 = vsel %vm82_vm0, %v79_v25, %v81_v2  ;;  %v91_v8 = vsel %vm82_vm0, %v81_v2, 0.0  ;;  %2854 = vmatprep.subr.msk.bf16.mxu0 %vm174_vm3, %v161_v59 }
  0x97   :  { %v136_v10 = vrot.slane %v89_v4, 4  ;;  %v137_v11 = vrot.slane %v91_v8, 4  ;;  %2851 = vmatmul.mubr.msk.bf16.vlgmr.msra.gmra.mxu0 %vm170_vm4, %v155_v61  ;;  %2852 = vmatprep.subr.msk.bf16.mxu1 %vm174_vm3, %v159_v3  ;;  %v182_v12 = vsel %vm174_vm3, %v158_v5, 0  ;;  %v188_v14 = vsel %vm174_vm3, %v160_v0, 0 }
  0x98   :  { %255 = vmatpush1.bf16.msra.mxu1 %v182_v12  ;;  %296 = vmatpush1.bf16.msra.mxu0 %v188_v14 }
  0x99   :  { %v154_v16 = vsel %vm146_vm1, %v3502_v13, %v137_v11  ;;  %313 = vmatprep.mubr.bf16.mxu0 %v3389_v9  ;;  %v153_v17 = vsel %vm146_vm1, %v3477_v6, %v136_v10  ;;  %v371_v6 = vlaneseq }
  0x9a   :  { %v163_v18 = vpack.c.bf16 %v124_v7, %v154_v16  ;;  %v162_v19 = vpack.c.bf16 %v115_v15, %v153_v17 }
  0x9b   :  { %2853 = vmatmul.mubr.msk.bf16.vlgmr.msra.gmra.mxu1 %vm170_vm4, %v155_v61  ;;  %v3560_v13 = vand.u32 127, %v371_v6 }
  0x9c   :  { %2856 = vmatprep.subr.msk.bf16.mxu1 %vm174_vm3, %v163_v18  ;;  %v194_v20 = vsel %vm174_vm3, %v162_v19, 0  ;;  %354 = vmatprep.mubr.bf16.mxu1 %v3389_v9 }
  0x9d   :  { %337 = vmatpush1.bf16.msra.mxu1 %v194_v20  ;;  %v373_v21 = vadd.s32 128, %v3560_v13  ;;  %v374_v23 = vadd.s32 256, %v3560_v13  ;;  %v375_v24 = vadd.s32 384, %v3560_v13  ;;  %v376_v31 = vadd.s32 512, %v3560_v13 }
  0x9e   :  { %v377_v37 = vadd.s32 640, %v3560_v13  ;;  %vm388_vm6 = vcmp.lt.s32.totalorder %v3560_v13, 49  ;;  %v378_v53 = vadd.s32 768, %v3560_v13  ;;  %v379_v54 = vadd.s32 896, %v3560_v13 }
  0x9f   :  { %2855 = vmatmul.mubr.msk.bf16.vlgmr.msra.gmra.mxu0 %vm170_vm4, %v155_v61  ;;  %v381_v26 = vand.u32 127, %v373_v21  ;;  %v382_v29 = vand.u32 127, %v374_v23  ;;  %v383_v30 = vand.u32 127, %v375_v24  ;;  %v384_v44 = vand.u32 127, %v376_v31 }
  0xa0   :  { %572 = vmatprep.mubr.bf16.mxu0 %v3389_v9  ;;  %v385_v51 = vand.u32 127, %v377_v37  ;;  %v386_v5 = vand.u32 127, %v378_v53  ;;  %v387_v0 = vand.u32 127, %v379_v54 }
  0xa1   :  { %vm3571_vm5 = vcmp.lt.s32.totalorder %v381_v26, 49  ;;  %vm3580_vm7 = vcmp.lt.s32.totalorder %v382_v29, 49  ;;  %vm3584_vm8 = vcmp.lt.s32.totalorder %v383_v30, 49  ;;  %vm3604_vm9 = vcmp.lt.s32.totalorder %v384_v44, 49  ;;  %v495_v26 = vld [vmem:[%s4339_s4] sm:$0xff] }
  0xa2   :  { %v168_v22 = vpop.permute.xlu0 %167  ;;  %vm3620_vm10 = vcmp.lt.s32.totalorder %v385_v51, 49  ;;  %vm3639_vm11 = vcmp.lt.s32.totalorder %v386_v5, 49  ;;  %vm3643_vm12 = vcmp.lt.s32.totalorder %v387_v0, 49  ;;  %vm2860_vm2 = vmpackc.low %vm3571_vm5, %vm3391_vm15 }
  0xa3   :  { %2857 = vmatmul.mubr.msk.bf16.vlgmr.msra.gmra.mxu1 %vm170_vm4, %v155_v61  ;;  %vm3688_vm4 = vmpackc.low %vm388_vm6, %vm3668_vm14 }
  0xa4   :  { %615 = vmatprep.mubr.bf16.mxu1 %v3389_v9  ;;  %vm3709_vm14 = vmpackc.low %vm3580_vm7, %vm3391_vm15 }
 0x157   :  { %v233_v25 = vpop.f32.mrf.mxu0 }
 0x158   :  { %v3565_v27 = vadd.f32 %v233_v25, %v168_v22 }
 0x159   :  { %v235_v28 = vpop.f32.mrf.mxu0 }
 0x15a   :  { %v3568_v32 = vadd.f32 %v235_v28, %v168_v22  ;;  %v363_v33 = vmax.f32 %v3565_v27, 0.0  ;;  %v496_v28 = vld [vmem:[%s4339_s4 + $0x8] sm:$0xff] }
 0x15b   :  { %v237_v35 = vpop.f32.mrf.mxu0  ;;  %v274_v36 = vpop.f32.mrf.mxu1 }
 0x15c   :  { %v364_v38 = vmax.f32 %v3568_v32, 0.0  ;;  %v3578_v39 = vadd.f32 %v274_v36, %v168_v22  ;;  %v396_v48 = vsel %vm388_vm6, %v363_v33, 0.0  ;;  %v3149_v32 = vld [vmem:[%s4338_s3] sm:$0xff]   ;;  %vm2869_vm6 = vmpackc.low %vm3584_vm8, %vm3391_vm15 }
 0x15d   :  { %v238_v41 = vpop.f32.mrf.mxu0  ;;  %v276_v42 = vpop.f32.mrf.mxu1 }
 0x15e   :  { %v397_v45 = vsel %vm3571_vm5, %v364_v38, 0.0  ;;  %v365_v46 = vmax.f32 %v3578_v39, 0.0  ;;  %v3593_v47 = vadd.f32 %v276_v42, %v168_v22  ;;  %vm512_vm5 = vcmask 195584  }
 0x15f   :  { %v315_v49 = vpop.f32.mrf.mxu0  ;;  %v278_v50 = vpop.f32.mrf.mxu1  ;;  %v3104_v52 = vpack.i.bf16 %v397_v45, %v396_v48 }
 0x160   :  { %v366_v55 = vmax.f32 %v3593_v47, 0.0  ;;  %v3602_v56 = vadd.f32 %v315_v49, %v168_v22  ;;  %v398_v60 = vsel %vm3580_vm7, %v365_v46, 0.0  ;;  %vm2877_vm7 = vmpackc.low %vm3620_vm10, %vm3391_vm15 }
 0x161   :  { %v317_v58 = vpop.f32.mrf.mxu0  ;;  %3105 = vrot.lane.b32.xlu1 %v3104_v52, %s3388_s13  ;;  %v279_v59 = vpop.f32.mrf.mxu1 }
 0x162   :  { %v399_v61 = vsel %vm3584_vm8, %v366_v55, 0.0  ;;  %v367_v62 = vmax.f32 %v3602_v56, 0.0  ;;  %v3618_v63 = vadd.f32 %v317_v58, %v168_v22  ;;  %vm2885_vm8 = vmpackc.low %vm3643_vm12, %vm3391_vm15  ;;  %v3163_v58 = vld [vmem:[#allocation2 + $0x80] ss:$8 sps:$4 sm:$0xff]  }
 0x163   :  { %v319_v2 = vpop.f32.mrf.mxu0  ;;  %v356_v3 = vpop.f32.mrf.mxu1  ;;  %v3109_v7 = vpack.i.bf16 %v399_v61, %v398_v60 }
 0x164   :  { %v368_v4 = vmax.f32 %v3618_v63, 0.0  ;;  %v3625_v8 = vadd.f32 %v356_v3, %v168_v22  ;;  %v400_v12 = vsel %vm3604_vm9, %v367_v62, 0.0 }
 0x165   :  { %v320_v10 = vpop.f32.mrf.mxu0  ;;  %v358_v11 = vpop.f32.mrf.mxu1  ;;  %3110 = vrot.lane.b32.xlu1 %v3109_v7, %s3388_s13 }
 0x166   :  { %v401_v14 = vsel %vm3620_vm10, %v368_v4, 0.0  ;;  %v369_v15 = vmax.f32 %v3625_v8, 0.0  ;;  %v3637_v16 = vadd.f32 %v358_v11, %v168_v22  ;;  %vm749_vm10 = vcmask 1040384  }
 0x167   :  { %v360_v19 = vpop.f32.mrf.mxu1  ;;  %v3119_v20 = vpack.i.bf16 %v401_v14, %v400_v12 }
 0x168   :  { %v370_v21 = vmax.f32 %v3637_v16, 0.0  ;;  %v402_v22 = vsel %vm3639_vm11, %v369_v15, 0.0  ;;  %v1000_v16 = vld [vmem:[#allocation2 + $0xa0] sm:$0xff] }
 0x169   :  { %3120 = vrot.lane.b32.xlu0 %v3119_v20, %s3388_s13  ;;  %v361_v23 = vpop.f32.mrf.mxu1  ;;  %3115 = vrot.lane.b32.xlu1 %v3104_v52, %s3390_s1  ;;  %v2919_v18 = vcombine.high %v1000_v16, %v1000_v16 }
 0x16a   :  { %v403_v24 = vsel %vm3643_vm12, %v370_v21, 0.0  ;;  %vm753_vm12 = vcmask 1042432  }
 0x16b   :  { %v3129_v25 = vpack.i.bf16 %v403_v24, %v402_v22 }
 0x16d   :  { %3125 = vrot.lane.b32.xlu0 %v3109_v7, %s3390_s1  ;;  %3130 = vrot.lane.b32.xlu1 %v3129_v25, %s3388_s13 }
 0x171   :  { %3135 = vrot.lane.b32.xlu0 %v3119_v20, %s3390_s1  ;;  %3140 = vrot.lane.b32.xlu1 %v3129_v25, %s3390_s1 }
 0x175   :  { %499 = vperm.xlu0 %3103, %v495_v26   ;;  %504 = vperm.xlu1 %3144, %v496_v28  }
 0x1d3   :  { %v3106_v29 = vpop.permute.xlu1 %3105 }
 0x1d4   :  { %v3108_v30 = vunpack.i.h.bf16 %v3106_v29  ;;  %v3107_v31 = vunpack.i.l.bf16 %v3106_v29 }
 0x1d6   :  { %v461_v35 = vsel %vm82_vm0, %v3107_v31, %v3108_v30 }
 0x1d7   :  { %v3111_v36 = vpop.permute.xlu1 %3110  ;;  %v487_v42 = vpack.c.bf16 %v461_v35, %v461_v35 }
 0x1d8   :  { %v3113_v37 = vunpack.i.h.bf16 %v3111_v36  ;;  %v3112_v41 = vunpack.i.l.bf16 %v3111_v36 }
 0x1d9   :  { %v517_v59 = vsel %vm146_vm1, %v487_v42, 0 }
 0x1da   :  { %v462_v44 = vsel %vm82_vm0, %v3108_v30, %v3112_v41  ;;  %v463_v45 = vsel %vm82_vm0, %v3112_v41, %v3113_v37 }
 0x1db   :  { %v488_v48 = vpack.c.bf16 %v462_v44, %v462_v44  ;;  %v3121_v49 = vpop.permute.xlu0 %3120  ;;  %v3116_v50 = vpop.permute.xlu1 %3115  ;;  %v489_v60 = vpack.c.bf16 %v463_v45, %v463_v45  ;;  %v2918_v45 = vcombine.low %v1000_v16, %v1000_v16 }
 0x1dc   :  { %v3123_v51 = vunpack.i.h.bf16 %v3121_v49  ;;  %v3122_v52 = vunpack.i.l.bf16 %v3121_v49  ;;  %v3118_v53 = vunpack.i.h.bf16 %v3116_v50  ;;  %v3117_v54 = vunpack.i.l.bf16 %v3116_v50  ;;  %v3159_v49 = vld [vmem:[#allocation2 + $0x94] ss:$8 sps:$4 sm:$0xff]   ;;  %v3154_v50 = vld [vmem:[#allocation2 + $0x58] ss:$8 sps:$4 sm:$0xff]  }
 0x1dd   :  { %2859 = vmatprep.subr.msk.bf16.mxu0 %vm146_vm1, %v488_v48  ;;  %v523_v27 = vsel %vm146_vm1, %v489_v60, 0  ;;  %v3156_v48 = vld [vmem:[#allocation2 + $0x5c] ss:$8 sps:$4 sm:$0xff]  }
 0x1de   :  { %v464_v61 = vsel %vm82_vm0, %v3113_v37, %v3122_v52  ;;  %v429_v2 = vsel %vm428_vm13, %v3117_v54, %v3118_v53  ;;  %553 = vmatpush1.bf16.msra.mxu0 %v517_v59  ;;  %v465_v3 = vsel %vm82_vm0, %v3122_v52, %v3123_v51  ;;  %v2865_v7 = vpack.c.bf16 %v363_v33, %v3117_v54  ;;  %v3162_v52 = vld [vmem:[#allocation2 + $0x4c] ss:$8 sps:$4 sm:$0xff]   ;;  %v3160_v54 = vld [vmem:[#allocation2 + $0x48] ss:$8 sps:$4 sm:$0xff]   ;;  %v3168_v59 = vld [vmem:[#allocation2 + $0x3c] ss:$8 sps:$4 sm:$0xff]  }
 0x1df   :  { %v490_v5 = vpack.c.bf16 %v464_v61, %v464_v61  ;;  %v2861_v0 = vpack.c.bf16 %v364_v38, %v429_v2  ;;  %v3126_v10 = vpop.permute.xlu0 %3125  ;;  %v3131_v11 = vpop.permute.xlu1 %3130  ;;  %v491_v33 = vpack.c.bf16 %v465_v3, %v465_v3  ;;  %v3171_v60 = vld [vmem:[#allocation2 + $0x74] ss:$8 sps:$4 sm:$0xff]   ;;  %v3166_v61 = vld [vmem:[#allocation2 + $0x38] ss:$8 sps:$4 sm:$0xff]  }
 0x1e0   :  { %v3128_v34 = vunpack.i.h.bf16 %v3126_v10  ;;  %v3127_v14 = vunpack.i.l.bf16 %v3126_v10  ;;  %v3133_v19 = vunpack.i.h.bf16 %v3131_v11  ;;  %v3132_v20 = vunpack.i.l.bf16 %v3131_v11  ;;  %v3169_v2 = vld [vmem:[#allocation2 + $0x70] ss:$8 sps:$4 sm:$0xff]   ;;  %v3770_v11 = vld [vmem:[#allocation2 + $0x180] sm:$0xff] }
 0x1e1   :  { %2868 = vmatprep.subr.msk.bf16.mxu1 %vm146_vm1, %v490_v5  ;;  %2862 = vmatprep.subr.msk.bf16.mxu0 %vm2860_vm2, %v2861_v0  ;;  %v768_v3 = vld [vmem:[#allocation2 + $0x30] sm:$0xff]  ;;  %v3768_v10 = vld [vmem:[#allocation2 + $0xd8] sm:$0xff]  ;;  %vm835_vm2 = vcmask 457728  }
 0x1e2   :  { %v430_v13 = vsel %vm428_vm13, %v3118_v53, %v3127_v14  ;;  %v431_v38 = vsel %vm428_vm13, %v3127_v14, %v3128_v34  ;;  %v476_v23 = vsel %vm82_vm0, %v3133_v19, 0.0  ;;  %v466_v22 = vsel %vm82_vm0, %v3123_v51, %v3132_v20  ;;  %596 = vmatpush1.bf16.msra.mxu1 %v523_v27  ;;  %2866 = vmatpush1.bf16.msk.msra.mxu0 %vm3688_vm4, %v2865_v7  ;;  %v3157_v51 = vld [vmem:[#allocation2 + $0x90] ss:$8 sps:$4 sm:$0xff]   ;;  %v3165_v53 = vld [vmem:[#allocation2 + $0x84] ss:$8 sps:$4 sm:$0xff]  }
 0x1e3   :  { %v2870_v25 = vpack.c.bf16 %v366_v55, %v431_v38  ;;  %v2873_v26 = vpack.c.bf16 %v365_v46, %v430_v13  ;;  %v494_v28 = vpack.c.bf16 %v476_v23, %v476_v23  ;;  %v492_v29 = vpack.c.bf16 %v466_v22, %v466_v22  ;;  %v3136_v30 = vpop.permute.xlu0 %3135  ;;  %v3141_v31 = vpop.permute.xlu1 %3140  ;;  %v1234_v0 = vld [vmem:[#allocation2 + $0x110] sm:$0xff] }
 0x1e4   :  { %v3138_v35 = vunpack.i.h.bf16 %v3136_v30  ;;  %v3137_v43 = vunpack.i.l.bf16 %v3136_v30  ;;  %v3143_v36 = vunpack.i.h.bf16 %v3141_v31  ;;  %v3142_v37 = vunpack.i.l.bf16 %v3141_v31 }
 0x1e5   :  { %2871 = vmatprep.subr.msk.bf16.mxu1 %vm2869_vm6, %v2870_v25  ;;  %2867 = vmatmul.mubr.msk.bf16.vlgmr.msra.gmra.mxu0 %vm512_vm5, %v3149_v32  ;;  %v467_v40 = vsel %vm82_vm0, %v3132_v20, %v3133_v19  ;;  %v529_v55 = vsel %vm146_vm1, %v491_v33, 0  ;;  %vm3734_vm0 = vmpackc.low %vm3604_vm9, %vm3391_vm15  ;;  %v2909_v5 = vcombine.high %v768_v3, %v768_v3  ;;  %v2939_v7 = vcombine.high %v1234_v0, %v1234_v0  ;;  %v3774_v20 = vld [vmem:[#allocation2 + $0x148] sm:$0xff] }
 0x1e6   :  { %v433_v41 = vsel %vm428_vm13, %v3137_v43, %v3138_v35  ;;  %v435_v47 = vsel %vm428_vm13, %v3142_v37, %v3143_v36  ;;  %2874 = vmatpush1.bf16.msk.msra.mxu1 %vm3709_vm14, %v2873_v26  ;;  %v432_v39 = vsel %vm428_vm13, %v3128_v34, %v3137_v43  ;;  %2876 = vmatprep.subr.msk.bf16.mxu0 %vm146_vm1, %v492_v29  ;;  %vm2888_vm9 = vmpackc.low %vm3639_vm11, %vm3391_vm15  ;;  %vm751_vm11 = vcmask 1041408  }
 0x1e7   :  { %v2878_v46 = vpack.c.bf16 %v368_v4, %v433_v41  ;;  %v2886_v1 = vpack.c.bf16 %v370_v21, %v435_v47  ;;  %639 = vmatpush1.bf16.msra.mxu0 %v529_v55  ;;  %2884 = vmatprep.subr.msk.bf16.mxu1 %vm146_vm1, %v494_v28  ;;  %v493_v44 = vpack.c.bf16 %v467_v40, %v467_v40  ;;  %v3805_v40 = vld [vmem:[#allocation2 + $0x1b8] sm:$0xff]  ;;  %vm759_vm15 = vcmask 1046528  }
 0x1e8   :  { %v2881_v57 = vpack.c.bf16 %v367_v62, %v432_v39  ;;  %v434_v63 = vsel %vm428_vm13, %v3138_v35, %v3142_v37  ;;  %658 = vmatprep.mubr.bf16.mxu0 %v3389_v9  ;;  %v799_v62 = vld [vmem:[#allocation2 + $0x68] sm:$0xff]  ;;  %v2908_v14 = vcombine.low %v768_v3, %v768_v3  ;;  %v2938_v19 = vcombine.low %v1234_v0, %v1234_v0 }
 0x1e9   :  { %2875 = vmatmul.mubr.msk.bf16.vlgmr.msra.gmra.mxu1 %vm512_vm5, %v3149_v32  ;;  %2879 = vmatprep.subr.msk.bf16.mxu0 %vm2877_vm7, %v2878_v46  ;;  %v535_v4 = vsel %vm146_vm1, %v493_v44, 0  ;;  %v2889_v56 = vpack.c.bf16 %v369_v15, %v434_v63  ;;  %v2899_v17 = vcombine.high %v799_v62, %v799_v62  ;;  %v2898_v21 = vcombine.low %v799_v62, %v799_v62 }
 0x1ea   :  { %701 = vmatprep.mubr.bf16.mxu1 %v3389_v9  ;;  %682 = vmatpush1.bf16.msra.mxu1 %v535_v4  ;;  %v1040_v15 = vsel %vm146_vm1, %v2918_v45, 0  ;;  %v2928_v13 = vcombine.low %v3768_v10, %v3768_v10  ;;  %v2958_v38 = vcombine.low %v3770_v11, %v3770_v11  ;;  %v2948_v24 = vcombine.low %v3774_v20, %v3774_v20 }
 0x1eb   :  { %2882 = vmatpush1.bf16.msk.msra.mxu0 %vm3734_vm0, %v2881_v57  ;;  %2887 = vmatprep.subr.msk.bf16.mxu1 %vm2885_vm8, %v2886_v1  ;;  %v840_v8 = vsel %vm146_vm1, %v2898_v21, 0  ;;  %v3791_v29 = vsel %vm146_vm1, %v2908_v14, 0  ;;  %v3794_v30 = vsel %vm146_vm1, %v2938_v19, 0  ;;  %v2929_v36 = vcombine.high %v3768_v10, %v3768_v10  ;;  %v3817_v1 = vld [vmem:[#allocation2 + $0x260] sm:$0xff]  ;;  %v3203_v10 = vld [vmem:[#allocation2 + $0x174] ss:$8 sps:$4 sm:$0xff]  }
 0x1ec   :  { %2920 = vmatprep.subr.msk.bf16.mxu0 %vm146_vm1, %v2919_v18  ;;  %v2959_v37 = vcombine.high %v3770_v11, %v3770_v11  ;;  %v3808_v39 = vsel %vm146_vm1, %v2928_v13, 0  ;;  %v3811_v46 = vsel %vm146_vm1, %v2958_v38, 0  ;;  %v2949_v55 = vcombine.high %v3774_v20, %v3774_v20 }
 0x1ed   :  { %v3824_v4 = vsel %vm146_vm1, %v2948_v24, 0  ;;  %vm756_vm13 = vcmask 1044480   ;;  %v2969_v18 = vcombine.high %v3805_v40, %v3805_v40 }
 0x1ee   :  { %2883 = vmatmul.mubr.msk.bf16.vlgmr.msra.gmra.mxu0 %vm512_vm5, %v3149_v32  ;;  %2890 = vmatpush1.bf16.msk.msra.mxu1 %vm2888_vm9, %v2889_v56 }
 0x1ef   :  { %1077 = vmatprep.mubr.bf16.mxu0 %v3389_v9  ;;  %2900 = vmatprep.subr.msk.bf16.mxu1 %vm146_vm1, %v2899_v17 }
 0x1f0   :  { %1054 = vmatpush1.bf16.msra.mxu0 %v1040_v15  ;;  %v3772_v12 = vpop.permute.xlu0 %499  ;;  %v3784_v22 = vpop.permute.xlu1 %504  ;;  %v2968_v15 = vcombine.low %v3805_v40, %v3805_v40 }
 0x1f1   :  { %2891 = vmatmul.mubr.msk.bf16.vlgmr.msra.gmra.mxu1 %vm512_vm5, %v3149_v32  ;;  %1055 = vmatprep.subr.bf16.mxu0 %v3159_v49  ;;  %v3777_v32 = vld [vmem:[#allocation2 + $0x1f0] sm:$0xff] }
 0x1f2   :  { %877 = vmatprep.mubr.bf16.mxu1 %v3389_v9  ;;  %854 = vmatpush1.bf16.msra.mxu1 %v840_v8  ;;  %v2978_v31 = vcombine.low %v3777_v32, %v3777_v32  ;;  %v2979_v42 = vcombine.high %v3777_v32, %v3777_v32  ;;  %v2999_v8 = vcombine.high %v3817_v1, %v3817_v1 }
 0x1f3   :  { %855 = vmatprep.subr.bf16.mxu1 %v3156_v48 }
 0x1f4   :  { %1056 = vmatpush1.bf16.msra.mxu0 %v3157_v51  ;;  %v3829_v17 = vsel %vm146_vm1, %v2978_v31, 0 }
 0x1f5   :  { %1057 = vmatprep.subr.bf16.mxu0 %v3165_v53  ;;  %v2998_v53 = vcombine.low %v3817_v1, %v3817_v1 }
 0x1f6   :  { %856 = vmatpush1.bf16.msra.mxu1 %v3154_v50 }
 0x1f7   :  { %857 = vmatprep.subr.bf16.mxu1 %v3162_v52  ;;  %v1984_v40 = vsel %vm146_vm1, %v2998_v53, 0  ;;  %v3253_v53 = vld [vmem:[#allocation2 + $0x244] ss:$8 sps:$4 sm:$0xff]  }
 0x1f8   :  { %1058 = vmatpush1.bf16.msra.mxu0 %v3163_v58 }
 0x1f9   :  { %1059 = vmatprep.subr.bf16.mxu0 %v3171_v60 }
 0x1fa   :  { %858 = vmatpush1.bf16.msra.mxu1 %v3160_v54 }
 0x1fb   :  { %859 = vmatprep.subr.bf16.mxu1 %v3168_v59 }
 0x1fc   :  { %1060 = vmatpush1.bf16.msra.mxu0 %v3169_v2 }
 0x1fd   :  { %2940 = vmatprep.subr.msk.bf16.mxu0 %vm146_vm1, %v2939_v7 }
 0x1fe   :  { %860 = vmatpush1.bf16.msra.mxu1 %v3166_v61 }
 0x1ff   :  { %2910 = vmatprep.subr.msk.bf16.mxu1 %vm146_vm1, %v2909_v5 }
 0x2a5   :  { %v574_v34 = vpop.f32.mrf.mxu0 }
 0x2a6   :  { %v575_v27 = vadd.f32 %v574_v34, %v3772_v12 }
 0x2a7   :  { %v576_v33 = vpop.f32.mrf.mxu0 }
 0x2a8   :  { %v577_v23 = vadd.f32 %v576_v33, %v3772_v12  ;;  %v3788_v25 = vmax.f32 %v575_v27, 0.0 }
 0x2a9   :  { %v617_v26 = vpop.f32.mrf.mxu1  ;;  %v578_v28 = vpop.f32.mrf.mxu0 }
 0x2aa   :  { %v3798_v35 = vmax.f32 %v577_v23, 0.0  ;;  %v618_v43 = vadd.f32 %v617_v26, %v3772_v12  ;;  %v579_v57 = vadd.f32 %v578_v28, %v3784_v22  ;;  %v770_v62 = vrot.slane %v3788_v25, 1 }
 0x2ab   :  { %v619_v41 = vpop.f32.mrf.mxu1  ;;  %v580_v47 = vpop.f32.mrf.mxu0  ;;  %v971_v50 = vrot.slane %v3788_v25, 2  ;;  %v1205_v51 = vrot.slane %v3788_v25, 4  ;;  %v1088_v52 = vrot.slane %v3788_v25, 3  ;;  %v1439_v60 = vrot.slane %v3788_v25, 6 }
 0x2ac   :  { %v3819_v44 = vmax.f32 %v618_v43, 0.0  ;;  %v620_v63 = vadd.f32 %v619_v41, %v3772_v12  ;;  %v973_v16 = vrot.slane %v3798_v35, 1  ;;  %v3845_v54 = vmax.f32 %v579_v57, 0.0 }
 0x2ad   :  { %v621_v56 = vpop.f32.mrf.mxu1  ;;  %v581_v58 = vadd.f32 %v580_v47, %v3784_v22  ;;  %v784_v3 = vsel %vm749_vm10, %v770_v62, %v3798_v35  ;;  %v729_v0 = vrot.slane %v3798_v35, 7  ;;  %v1207_v27 = vrot.slane %v3798_v35, 3 }
 0x2ae   :  { %v3833_v21 = vmax.f32 %v620_v63, 0.0  ;;  %v772_v45 = vrot.slane %v3819_v44, 7  ;;  %v660_v48 = vpop.f32.mrf.mxu0  ;;  %v985_v5 = vsel %vm749_vm10, %v971_v50, %v973_v16  ;;  %v622_v33 = vadd.f32 %v621_v56, %v3784_v22 }
 0x2af   :  { %v623_v49 = vpop.f32.mrf.mxu1  ;;  %v661_v59 = vadd.f32 %v660_v48, %v3772_v12  ;;  %v732_v23 = vrot.slane %v3819_v44, 6  ;;  %v986_v43 = vsel %vm751_vm11, %v985_v5, %v3819_v44  ;;  %v750_v63 = vsel %vm749_vm10, %v3788_v25, %v729_v0 }
 0x2b0   :  { %v662_v61 = vpop.f32.mrf.mxu0  ;;  %v774_v2 = vrot.slane %v3833_v21, 6  ;;  %v785_v19 = vsel %vm751_vm11, %v784_v3, %v772_v45  ;;  %v975_v38 = vrot.slane %v3833_v21, 7  ;;  %v624_v56 = vadd.f32 %v623_v49, %v3784_v22 }
 0x2b1   :  { %v3855_v7 = vmax.f32 %v661_v59, 0.0  ;;  %v663_v34 = vadd.f32 %v662_v61, %v3772_v12  ;;  %v703_v14 = vpop.f32.mrf.mxu1  ;;  %v735_v48 = vrot.slane %v3833_v21, 5  ;;  %v752_v5 = vsel %vm751_vm11, %v750_v63, %v732_v23 }
 0x2b2   :  { %v704_v13 = vadd.f32 %v703_v14, %v3772_v12  ;;  %v786_v57 = vsel %vm753_vm12, %v785_v19, %v774_v2  ;;  %v664_v62 = vpop.f32.mrf.mxu0  ;;  %v987_v61 = vsel %vm753_vm12, %v986_v43, %v975_v38  ;;  %v3898_v43 = vmax.f32 %v622_v33, 0.0 }
 0x2b3   :  { %v3864_v24 = vmax.f32 %v663_v34, 0.0  ;;  %v705_v26 = vpop.f32.mrf.mxu1  ;;  %v776_v28 = vrot.slane %v3855_v7, 5  ;;  %v977_v31 = vrot.slane %v3855_v7, 6  ;;  %v665_v0 = vadd.f32 %v664_v62, %v3784_v22 }
 0x2b4   :  { %v3870_v41 = vmax.f32 %v704_v13, 0.0  ;;  %v706_v47 = vadd.f32 %v705_v26, %v3772_v12  ;;  %v738_v19 = vrot.slane %v3855_v7, 4  ;;  %v3893_v13 = vmax.f32 %v581_v58, 0.0 }
 0x2b5   :  { %v778_v16 = vrot.slane %v3864_v24, 4  ;;  %v787_v45 = vsel %vm146_vm1, %v786_v57, %v776_v28  ;;  %v979_v12 = vrot.slane %v3864_v24, 5  ;;  %v988_v49 = vsel %vm146_vm1, %v987_v61, %v977_v31  ;;  %v666_v57 = vpop.f32.mrf.mxu0  ;;  %v707_v63 = vpop.f32.mrf.mxu1 }
 0x2b6   :  { %v3880_v50 = vmax.f32 %v706_v47, 0.0  ;;  %v780_v59 = vrot.slane %v3870_v41, 3  ;;  %v981_v3 = vrot.slane %v3870_v41, 4  ;;  %v1209_v28 = vrot.slane %v3819_v44, 2 }
 0x2b7   :  { %v788_v2 = vsel %vm756_vm13, %v787_v45, %v778_v16  ;;  %v989_v26 = vsel %vm756_vm13, %v988_v49, %v979_v12  ;;  %v1211_v47 = vrot.slane %v3833_v21, 1  ;;  %v3178_v16 = vld [vmem:[#allocation2 + $0x24] ss:$8 sps:$4 sm:$0xff]   ;;  %v741_v45 = vrot.slane %v3864_v24, 3 }
 0x2b8   :  { %v782_v34 = vrot.slane %v3880_v50, 2  ;;  %v789_v14 = vsel %vm174_vm3, %v788_v2, %v780_v59  ;;  %v983_v38 = vrot.slane %v3880_v50, 3  ;;  %v990_v31 = vsel %vm174_vm3, %v989_v26, %v981_v3  ;;  %v3181_v2 = vld [vmem:[#allocation2 + $0x104] ss:$8 sps:$4 sm:$0xff]  }
 0x2b9   :  { %v754_v59 = vsel %vm753_vm12, %v752_v5, %v735_v48  ;;  %v3906_v12 = vmax.f32 %v624_v56, 0.0  ;;  %v3908_v33 = vmax.f32 %v665_v0, 0.0  ;;  %v1213_v49 = vrot.slane %v3864_v24, 7  ;;  %v3176_v0 = vld [vmem:[#allocation2 + $0x20] ss:$8 sps:$4 sm:$0xff]  }
 0x2ba   :  { %v790_v23 = vsel %vm759_vm15, %v789_v14, %v782_v34  ;;  %v991_v58 = vsel %vm759_vm15, %v990_v31, %v983_v38  ;;  %v755_v3 = vsel %vm146_vm1, %v754_v59, %v738_v19  ;;  %v1219_v34 = vsel %vm749_vm10, %v1205_v51, %v1207_v27  ;;  %v3179_v51 = vld [vmem:[#allocation2 + $0x100] ss:$8 sps:$4 sm:$0xff]   ;;  %v3184_v27 = vld [vmem:[#allocation2 + $0x14] ss:$8 sps:$4 sm:$0xff]   ;;  %v709_v59 = vpop.f32.mrf.mxu1 }
 0x2bb   :  { %v791_v62 = vpack.c.bf16 %v790_v23, %v790_v23  ;;  %v992_v61 = vpack.c.bf16 %v991_v58, %v991_v58  ;;  %v1090_v14 = vrot.slane %v3798_v35, 2  ;;  %v1092_v48 = vrot.slane %v3819_v44, 1 }
 0x2bc   :  { %v3919_v56 = vadd.f32 %v666_v57, %v3784_v22  ;;  %v3922_v5 = vadd.f32 %v707_v63, %v3784_v22  ;;  %v744_v19 = vrot.slane %v3870_v41, 2  ;;  %v1220_v38 = vsel %vm751_vm11, %v1219_v34, %v1209_v28  ;;  %v3187_v57 = vld [vmem:[#allocation2 + $0xf4] ss:$8 sps:$4 sm:$0xff]  }
 0x2bd   :  { %2901 = vmatmul.mubr.msk.bf16.vlgmr.msra.gmra.mxu1 %vm835_vm2, %v791_v62  ;;  %2921 = vmatmul.mubr.msk.bf16.vlgmr.msra.gmra.mxu0 %vm835_vm2, %v992_v61  ;;  %v757_v26 = vsel %vm756_vm13, %v755_v3, %v741_v45  ;;  %v1215_v23 = vrot.slane %v3870_v41, 6  ;;  %v1221_v31 = vsel %vm753_vm12, %v1220_v38, %v1211_v47  ;;  %v1441_v63 = vrot.slane %v3798_v35, 5  ;;  %v3182_v61 = vld [vmem:[#allocation2 + $0x10] ss:$8 sps:$4 sm:$0xff]  }
 0x2be   :  { %939 = vmatpush1.bf16.msra.mxu1 %v3791_v29  ;;  %1288 = vmatpush1.bf16.msra.mxu0 %v3794_v30  ;;  %v1094_v29 = vrot.slane %v3855_v7, 7  ;;  %v1222_v28 = vsel %vm146_vm1, %v1221_v31, %v3855_v7  ;;  %v1102_v30 = vsel %vm749_vm10, %v1088_v52, %v1090_v14  ;;  %v1443_v62 = vrot.slane %v3819_v44, 4  ;;  %v3190_v14 = vld [vmem:[#allocation2 + $0x4] ss:$8 sps:$4 sm:$0xff]  }
 0x2bf   :  { %940 = vmatprep.subr.bf16.mxu1 %v3178_v16  ;;  %1289 = vmatprep.subr.bf16.mxu0 %v3181_v2  ;;  %v1223_v47 = vsel %vm756_vm13, %v1222_v28, %v1213_v49  ;;  %v1096_v58 = vrot.slane %v3864_v24, 6  ;;  %v1103_v16 = vsel %vm751_vm11, %v1102_v30, %v1092_v48  ;;  %v1445_v45 = vrot.slane %v3833_v21, 3  ;;  %v3185_v49 = vld [vmem:[#allocation2 + $0xf0] ss:$8 sps:$4 sm:$0xff]   ;;  %v3193_v28 = vld [vmem:[#allocation2 + $0xe4] ss:$8 sps:$4 sm:$0xff]  }
 0x2c0   :  { %962 = vmatprep.mubr.bf16.mxu1 %v3389_v9  ;;  %1311 = vmatprep.mubr.bf16.mxu0 %v3389_v9  ;;  %v747_v2 = vrot.slane %v3880_v50, 1  ;;  %v1217_v52 = vrot.slane %v3880_v50, 5  ;;  %v1104_v3 = vsel %vm753_vm12, %v1103_v16, %v3833_v21  ;;  %v1447_v34 = vrot.slane %v3855_v7, 2 }
 0x2c1   :  { %v758_v48 = vsel %vm174_vm3, %v757_v26, %v744_v19  ;;  %v1105_v38 = vsel %vm146_vm1, %v1104_v3, %v1094_v29  ;;  %v1453_v31 = vsel %vm749_vm10, %v1439_v60, %v1441_v63  ;;  %v1224_v30 = vsel %vm174_vm3, %v1223_v47, %v1215_v23  ;;  %v3188_v60 = vld [vmem:[#allocation2] ss:$8 sps:$4 sm:$0xff]  }
 0x2c2   :  { %941 = vmatpush1.bf16.msra.mxu1 %v3176_v0  ;;  %1290 = vmatpush1.bf16.msra.mxu0 %v3179_v51  ;;  %v1449_v0 = vrot.slane %v3864_v24, 1  ;;  %v1098_v16 = vrot.slane %v3870_v41, 5  ;;  %v1454_v51 = vsel %vm751_vm11, %v1453_v31, %v1443_v62  ;;  %v710_v19 = vadd.f32 %v709_v59, %v3784_v22  ;;  %v3191_v47 = vld [vmem:[#allocation2 + $0xe0] ss:$8 sps:$4 sm:$0xff]  }
 0x2c3   :  { %942 = vmatprep.subr.bf16.mxu1 %v3184_v27  ;;  %1291 = vmatprep.subr.bf16.mxu0 %v3187_v57  ;;  %v1324_v27 = vrot.slane %v3798_v35, 4  ;;  %v1106_v26 = vsel %vm756_vm13, %v1105_v38, %v1096_v58  ;;  %v1455_v29 = vsel %vm753_vm12, %v1454_v51, %v1445_v45  ;;  %v1322_v3 = vrot.slane %v3788_v25, 5 }
 0x2c4   :  { %v760_v57 = vsel %vm759_vm15, %v758_v48, %v747_v2  ;;  %v1100_v23 = vrot.slane %v3880_v50, 4  ;;  %v1456_v63 = vsel %vm146_vm1, %v1455_v29, %v1447_v34  ;;  %v1326_v62 = vrot.slane %v3819_v44, 3 }
 0x2c5   :  { %v1225_v22 = vsel %vm759_vm15, %v1224_v30, %v1217_v52  ;;  %v1451_v58 = vrot.slane %v3880_v50, 7  ;;  %v1457_v45 = vsel %vm756_vm13, %v1456_v63, %v1449_v0  ;;  %v1336_v59 = vsel %vm749_vm10, %v1322_v3, %v1324_v27 }
 0x2c6   :  { %943 = vmatpush1.bf16.msra.mxu1 %v3182_v61  ;;  %1292 = vmatpush1.bf16.msra.mxu0 %v3185_v49  ;;  %v1107_v61 = vsel %vm174_vm3, %v1106_v26, %v1098_v16  ;;  %v1458_v2 = vsel %vm174_vm3, %v1457_v45, %v3870_v41  ;;  %v1674_v34 = vrot.slane %v3893_v13, 7  ;;  %v1677_v49 = vrot.slane %v3898_v43, 6 }
 0x2c7   :  { %944 = vmatprep.subr.bf16.mxu1 %v3190_v14  ;;  %1293 = vmatprep.subr.bf16.mxu0 %v3193_v28  ;;  %v3979_v14 = vmax.f32 %v3919_v56, 0.0  ;;  %v3982_v52 = vmax.f32 %v3922_v5, 0.0  ;;  %v3984_v48 = vmax.f32 %v710_v19, 0.0  ;;  %v1328_v38 = vrot.slane %v3833_v21, 2  ;;  %v3200_v56 = vld [vmem:[#allocation2 + $0xcc] ss:$8 sps:$4 sm:$0xff]  }
 0x2c8   :  { %v761_v0 = vpack.c.bf16 %v760_v57, %v760_v57  ;;  %v1226_v31 = vpack.c.bf16 %v1225_v22, %v1225_v22  ;;  %v1330_v28 = vrot.slane %v3855_v7, 1  ;;  %v1337_v30 = vsel %vm751_vm11, %v1336_v59, %v1326_v62 }
 0x2c9   :  { %v3994_v5 = vsel %vm759_vm15, %v1107_v61, %v1100_v23  ;;  %v3997_v16 = vsel %vm759_vm15, %v1458_v2, %v1451_v58  ;;  %v1680_v51 = vrot.slane %v3906_v12, 5  ;;  %v1694_v27 = vsel %vm749_vm10, %v3845_v54, %v1674_v34  ;;  %v3209_v58 = vld [vmem:[#allocation2 + $0x164] ss:$8 sps:$4 sm:$0xff]  }
 0x2ca   :  { %945 = vmatpush1.bf16.msra.mxu1 %v3188_v60  ;;  %1294 = vmatpush1.bf16.msra.mxu0 %v3191_v47  ;;  %v1695_v19 = vsel %vm751_vm11, %v1694_v27, %v1677_v49  ;;  %v1558_v26 = vrot.slane %v3798_v35, 6  ;;  %v1560_v29 = vrot.slane %v3819_v44, 5  ;;  %v1338_v3 = vsel %vm753_vm12, %v1337_v30, %v1328_v38  ;;  %v3204_v38 = vld [vmem:[#allocation2 + $0xb8] ss:$8 sps:$4 sm:$0xff]  }
 0x2cb   :  { %2930 = vmatprep.subr.msk.bf16.mxu1 %vm146_vm1, %v2929_v36  ;;  %2960 = vmatprep.subr.msk.bf16.mxu0 %vm146_vm1, %v2959_v37  ;;  %v1332_v36 = vrot.slane %v3870_v41, 7  ;;  %v1683_v60 = vrot.slane %v3908_v33, 4  ;;  %v1556_v57 = vrot.slane %v3788_v25, 7  ;;  %v1562_v11 = vrot.slane %v3833_v21, 4  ;;  %v3198_v37 = vld [vmem:[#allocation2 + $0xc8] ss:$8 sps:$4 sm:$0xff]  }
 0x2cc   :  { %v1109_v35 = vpack.c.bf16 %v3994_v5, %v3994_v5  ;;  %v1460_v44 = vpack.c.bf16 %v3997_v16, %v3997_v16  ;;  %v4022_v23 = vsel %vm146_vm1, %v1338_v3, %v1330_v28  ;;  %v1564_v63 = vrot.slane %v3855_v7, 3  ;;  %v3201_v25 = vld [vmem:[#allocation2 + $0x170] ss:$8 sps:$4 sm:$0xff]   ;;  %v3206_v21 = vld [vmem:[#allocation2 + $0xbc] ss:$8 sps:$4 sm:$0xff]  }
 0x2cd   :  { %2911 = vmatmul.mubr.msk.bf16.vlgmr.msra.gmra.mxu1 %vm835_vm2, %v761_v0  ;;  %2941 = vmatmul.mubr.msk.bf16.vlgmr.msra.gmra.mxu0 %vm835_vm2, %v1226_v31  ;;  %v1696_v62 = vsel %vm753_vm12, %v1695_v19, %v1680_v51  ;;  %v1570_v47 = vsel %vm749_vm10, %v1556_v57, %v1558_v26  ;;  %v1917_v22 = vrot.slane %v3893_v13, 1  ;;  %v1568_v45 = vrot.slane %v3870_v41, 1  ;;  %v3212_v51 = vld [vmem:[#allocation2 + $0xac] ss:$8 sps:$4 sm:$0xff]  }
 0x2ce   :  { %1171 = vmatpush1.bf16.msra.mxu1 %v3808_v39  ;;  %1522 = vmatpush1.bf16.msra.mxu0 %v3811_v46  ;;  %v1566_v39 = vrot.slane %v3864_v24, 2  ;;  %v1571_v7 = vsel %vm751_vm11, %v1570_v47, %v1560_v29  ;;  %v1915_v46 = vrot.slane %v3845_v54, 2  ;;  %v1919_v59 = vrot.slane %v3906_v12, 7  ;;  %v3215_v29 = vld [vmem:[#allocation2 + $0x154] ss:$8 sps:$4 sm:$0xff]  }
 0x2cf   :  { %1172 = vmatprep.subr.bf16.mxu1 %v3200_v56  ;;  %1523 = vmatprep.subr.bf16.mxu0 %v3203_v10  ;;  %v1686_v61 = vrot.slane %v3979_v14, 3  ;;  %v1697_v2 = vsel %vm146_vm1, %v1696_v62, %v1683_v60  ;;  %v1572_v34 = vsel %vm753_vm12, %v1571_v7, %v1562_v11  ;;  %v1921_v49 = vrot.slane %v3908_v33, 6  ;;  %v3207_v56 = vld [vmem:[#allocation2 + $0x160] ss:$8 sps:$4 sm:$0xff]  }
 0x2d0   :  { %1194 = vmatprep.mubr.bf16.mxu1 %v3389_v9  ;;  %1545 = vmatprep.mubr.bf16.mxu0 %v3389_v9  ;;  %v1573_v0 = vsel %vm146_vm1, %v1572_v34, %v1564_v63  ;;  %v1923_v31 = vrot.slane %v3979_v14, 5  ;;  %v1925_v28 = vrot.slane %v3982_v52, 4  ;;  %v1929_v30 = vsel %vm749_vm10, %v1915_v46, %v1917_v22  ;;  %v3210_v62 = vld [vmem:[#allocation2 + $0xa8] ss:$8 sps:$4 sm:$0xff]  }
 0x2d1   :  { %v1574_v27 = vsel %vm756_vm13, %v1573_v0, %v1566_v39  ;;  %v1930_v10 = vsel %vm751_vm11, %v1929_v30, %v3898_v43  ;;  %v1798_v19 = vrot.slane %v3845_v54, 1  ;;  %v1800_v26 = vrot.slane %v3898_v43, 7 }
 0x2d2   :  { %1173 = vmatpush1.bf16.msra.mxu1 %v3198_v37  ;;  %1524 = vmatpush1.bf16.msra.mxu0 %v3201_v25  ;;  %v1575_v3 = vsel %vm174_vm3, %v1574_v27, %v1568_v45  ;;  %v1927_v60 = vrot.slane %v3984_v48, 3  ;;  %v1931_v57 = vsel %vm753_vm12, %v1930_v10, %v1919_v59  ;;  %v1802_v11 = vrot.slane %v3906_v12, 6  ;;  %v3213_v45 = vld [vmem:[#allocation2 + $0x150] ss:$8 sps:$4 sm:$0xff]  }
 0x2d3   :  { %1174 = vmatprep.subr.bf16.mxu1 %v3206_v21  ;;  %1525 = vmatprep.subr.bf16.mxu0 %v3209_v58  ;;  %v4055_v37 = vsel %vm759_vm15, %v1575_v3, %v3880_v50  ;;  %v1932_v63 = vsel %vm146_vm1, %v1931_v57, %v1921_v49  ;;  %v1804_v25 = vrot.slane %v3908_v33, 5  ;;  %v1806_v21 = vrot.slane %v3979_v14, 4  ;;  %v3225_v3 = vld [vmem:[#allocation2 + $0x1e4] ss:$8 sps:$4 sm:$0xff]  }
 0x2d4   :  { %v1933_v39 = vsel %vm756_vm13, %v1932_v63, %v1923_v31  ;;  %v1808_v47 = vrot.slane %v3982_v52, 3  ;;  %v1810_v22 = vrot.slane %v3984_v48, 2  ;;  %v1812_v58 = vsel %vm749_vm10, %v1798_v19, %v3893_v13 }
 0x2d5   :  { %v1934_v7 = vsel %vm174_vm3, %v1933_v39, %v1925_v28  ;;  %v1813_v46 = vsel %vm751_vm11, %v1812_v58, %v1800_v26  ;;  %v2149_v59 = vrot.slane %v3845_v54, 4  ;;  %v2151_v34 = vrot.slane %v3893_v13, 3  ;;  %v3223_v39 = vld [vmem:[#allocation2 + $0x1e0] ss:$8 sps:$4 sm:$0xff]   ;;  %v3231_v58 = vld [vmem:[#allocation2 + $0x1d4] ss:$8 sps:$4 sm:$0xff]  }
 0x2d6   :  { %1175 = vmatpush1.bf16.msra.mxu1 %v3204_v38  ;;  %1526 = vmatpush1.bf16.msra.mxu0 %v3207_v56  ;;  %v4070_v49 = vsel %vm759_vm15, %v1934_v7, %v1927_v60  ;;  %v1814_v38 = vsel %vm753_vm12, %v1813_v46, %v1802_v11  ;;  %v2153_v0 = vrot.slane %v3898_v43, 2  ;;  %v2155_v31 = vrot.slane %v3906_v12, 1 }
 0x2d7   :  { %1176 = vmatprep.subr.bf16.mxu1 %v3212_v51  ;;  %1527 = vmatprep.subr.bf16.mxu0 %v3215_v29  ;;  %v4078_v28 = vsel %vm756_vm13, %v4022_v23, %v3864_v24  ;;  %v1689_v30 = vrot.slane %v3982_v52, 2  ;;  %v4082_v56 = vsel %vm756_vm13, %v1697_v2, %v1686_v61  ;;  %v1815_v51 = vsel %vm146_vm1, %v1814_v38, %v1804_v25  ;;  %v3222_v24 = vld [vmem:[#allocation2 + $0x13c] ss:$8 sps:$4 sm:$0xff]   ;;  %v3220_v25 = vld [vmem:[#allocation2 + $0x138] ss:$8 sps:$4 sm:$0xff]  }
 0x2d8   :  { %v1816_v27 = vsel %vm756_vm13, %v1815_v51, %v1806_v21  ;;  %v2157_v10 = vrot.slane %v3979_v14, 7  ;;  %v2159_v19 = vrot.slane %v3982_v52, 6  ;;  %v2163_v26 = vsel %vm749_vm10, %v2149_v59, %v2151_v34 }
 0x2d9   :  { %v1817_v23 = vsel %vm174_vm3, %v1816_v27, %v1808_v47  ;;  %v2164_v61 = vsel %vm751_vm11, %v2163_v26, %v2153_v0  ;;  %v2034_v2 = vrot.slane %v3893_v13, 2  ;;  %v2036_v29 = vrot.slane %v3898_v43, 1  ;;  %v3228_v47 = vld [vmem:[#allocation2 + $0x12c] ss:$8 sps:$4 sm:$0xff]   ;;  %v3229_v26 = vld [vmem:[#allocation2 + $0x1d0] ss:$8 sps:$4 sm:$0xff]  }
 0x2da   :  { %1177 = vmatpush1.bf16.msra.mxu1 %v3210_v62  ;;  %1528 = vmatpush1.bf16.msra.mxu0 %v3213_v45  ;;  %v4102_v60 = vsel %vm759_vm15, %v1817_v23, %v1810_v22  ;;  %v2161_v20 = vrot.slane %v3984_v48, 5  ;;  %v2032_v57 = vrot.slane %v3845_v54, 3  ;;  %v2040_v11 = vrot.slane %v3979_v14, 6 }
 0x2db   :  { %2950 = vmatprep.subr.msk.bf16.mxu1 %vm146_vm1, %v2949_v55  ;;  %2980 = vmatprep.subr.msk.bf16.mxu0 %vm146_vm1, %v2979_v42  ;;  %v2165_v55 = vsel %vm753_vm12, %v2164_v61, %v2155_v31  ;;  %v2038_v42 = vrot.slane %v3908_v33, 7  ;;  %v2042_v63 = vrot.slane %v3982_v52, 5  ;;  %v2383_v21 = vrot.slane %v3845_v54, 6  ;;  %v3226_v31 = vld [vmem:[#allocation2 + $0x128] ss:$8 sps:$4 sm:$0xff]  }
 0x2dc   :  { %v2166_v32 = vsel %vm146_vm1, %v2165_v55, %v3908_v33  ;;  %v2385_v62 = vrot.slane %v3893_v13, 5  ;;  %v2389_v22 = vrot.slane %v3906_v12, 3  ;;  %v2391_v46 = vrot.slane %v3908_v33, 2 }
 0x2dd   :  { %2931 = vmatmul.mubr.msk.bf16.vlgmr.msra.gmra.mxu1 %vm835_vm2, %v1109_v35  ;;  %2961 = vmatmul.mubr.msk.bf16.vlgmr.msra.gmra.mxu0 %vm835_vm2, %v1460_v44  ;;  %v2167_v5 = vsel %vm756_vm13, %v2166_v32, %v2157_v10  ;;  %v2046_v35 = vsel %vm749_vm10, %v2032_v57, %v2034_v2  ;;  %v2393_v34 = vrot.slane %v3979_v14, 1  ;;  %v2395_v38 = vrot.slane %v3984_v48, 7 }
 0x2de   :  { %1405 = vmatpush1.bf16.msra.mxu1 %v3824_v4  ;;  %1763 = vmatpush1.bf16.msra.mxu0 %v3829_v17  ;;  %v2168_v16 = vsel %vm174_vm3, %v2167_v5, %v2159_v19  ;;  %v2047_v44 = vsel %vm751_vm11, %v2046_v35, %v2036_v29  ;;  %v2387_v4 = vrot.slane %v3898_v43, 4  ;;  %v2044_v17 = vrot.slane %v3984_v48, 4 }
 0x2df   :  { %1406 = vmatprep.subr.bf16.mxu1 %v3222_v24  ;;  %1764 = vmatprep.subr.bf16.mxu0 %v3225_v3  ;;  %v4132_v45 = vsel %vm759_vm15, %v2168_v16, %v2161_v20  ;;  %v2048_v7 = vsel %vm753_vm12, %v2047_v44, %v3906_v12  ;;  %v2397_v0 = vsel %vm749_vm10, %v2383_v21, %v2385_v62  ;;  %v2266_v10 = vrot.slane %v3845_v54, 5  ;;  %v3234_v24 = vld [vmem:[#allocation2 + $0x11c] ss:$8 sps:$4 sm:$0xff]  }
 0x2e0   :  { %1428 = vmatprep.mubr.bf16.mxu1 %v3389_v9  ;;  %1786 = vmatprep.mubr.bf16.mxu0 %v3389_v9  ;;  %v2049_v59 = vsel %vm146_vm1, %v2048_v7, %v2038_v42  ;;  %v2398_v27 = vsel %vm751_vm11, %v2397_v0, %v2387_v4  ;;  %v2268_v19 = vrot.slane %v3893_v13, 4  ;;  %v2270_v2 = vrot.slane %v3898_v43, 3  ;;  %v3237_v3 = vld [vmem:[#allocation2 + $0x1c4] ss:$8 sps:$4 sm:$0xff]  }
 0x2e1   :  { %v2050_v51 = vsel %vm756_vm13, %v2049_v59, %v2040_v11  ;;  %v2399_v61 = vsel %vm753_vm12, %v2398_v27, %v2389_v22  ;;  %v2272_v29 = vrot.slane %v3906_v12, 2  ;;  %v1334_v20 = vrot.slane %v3880_v50, 6  ;;  %v3232_v50 = vld [vmem:[#allocation2 + $0x118] ss:$8 sps:$4 sm:$0xff]  }
 0x2e2   :  { %1407 = vmatpush1.bf16.msra.mxu1 %v3220_v25  ;;  %1765 = vmatpush1.bf16.msra.mxu0 %v3223_v39  ;;  %v2051_v23 = vsel %vm174_vm3, %v2050_v51, %v2042_v63  ;;  %v2400_v57 = vsel %vm146_vm1, %v2399_v61, %v2391_v46  ;;  %v2274_v32 = vrot.slane %v3908_v33, 1  ;;  %v1341_v42 = vsel %vm174_vm3, %v4078_v28, %v1332_v36  ;;  %v3235_v28 = vld [vmem:[#allocation2 + $0x1c0] ss:$8 sps:$4 sm:$0xff]  }
 0x2e3   :  { %1408 = vmatprep.subr.bf16.mxu1 %v3228_v47  ;;  %1766 = vmatprep.subr.bf16.mxu0 %v3231_v58  ;;  %v4153_v55 = vsel %vm759_vm15, %v2051_v23, %v2044_v17  ;;  %v1692_v11 = vrot.slane %v3984_v48, 1  ;;  %v2401_v63 = vsel %vm756_vm13, %v2400_v57, %v2393_v34  ;;  %v2280_v25 = vsel %vm749_vm10, %v2266_v10, %v2268_v19  ;;  %v3248_v27 = vld [vmem:[#allocation2 + $0x198] ss:$8 sps:$4 sm:$0xff]   ;;  %v3256_v19 = vld [vmem:[#allocation2 + $0x18c] ss:$8 sps:$4 sm:$0xff]  }
 0x2e4   :  { %v1699_v5 = vsel %vm174_vm3, %v4082_v56, %v1689_v30  ;;  %v2402_v35 = vsel %vm174_vm3, %v2401_v63, %v3982_v52  ;;  %v2276_v41 = vrot.slane %v3982_v52, 7  ;;  %v2281_v36 = vsel %vm751_vm11, %v2280_v25, %v2270_v2  ;;  %v3251_v10 = vld [vmem:[#allocation2 + $0x240] ss:$8 sps:$4 sm:$0xff]   ;;  %v2178_v23 = vld [vmem:[#allocation2 + $0x2d0] sm:$0xff]  ;;  %v3269_v25 = vld [vmem:[#allocation2 + $0x2c4] ss:$8 sps:$4 sm:$0xff]  }
 0x2e5   :  { %v4173_v21 = vsel %vm759_vm15, %v2402_v35, %v2395_v38  ;;  %v2278_v62 = vrot.slane %v3984_v48, 6  ;;  %v2282_v39 = vsel %vm753_vm12, %v2281_v36, %v2272_v29  ;;  %v2502_v47 = vrot.slane %v3893_v13, 6  ;;  %v3242_v38 = vld [vmem:[#allocation2 + $0x1a8] ss:$8 sps:$4 sm:$0xff]   ;;  %v3275_v35 = vld [vmem:[#allocation2 + $0x2b4] ss:$8 sps:$4 sm:$0xff]  }
 0x2e6   :  { %1409 = vmatpush1.bf16.msra.mxu1 %v3226_v31  ;;  %1767 = vmatpush1.bf16.msra.mxu0 %v3229_v26  ;;  %v1342_v30 = vsel %vm759_vm15, %v1341_v42, %v1334_v20  ;;  %v2283_v56 = vsel %vm146_vm1, %v2282_v39, %v2274_v32  ;;  %v2500_v16 = vrot.slane %v3845_v54, 7  ;;  %v2504_v44 = vrot.slane %v3898_v43, 5  ;;  %v3250_v31 = vld [vmem:[#allocation2 + $0x19c] ss:$8 sps:$4 sm:$0xff]   ;;  %v3254_v61 = vld [vmem:[#allocation2 + $0x188] ss:$8 sps:$4 sm:$0xff]  }
 0x2e7   :  { %1410 = vmatprep.subr.bf16.mxu1 %v3234_v24  ;;  %1768 = vmatprep.subr.bf16.mxu0 %v3237_v3  ;;  %v1700_v4 = vsel %vm759_vm15, %v1699_v5, %v1692_v11  ;;  %v2284_v22 = vsel %vm756_vm13, %v2283_v56, %v3979_v14  ;;  %v2506_v58 = vrot.slane %v3906_v12, 4  ;;  %v2508_v17 = vrot.slane %v3908_v33, 3  ;;  %v3244_v12 = vld [vmem:[#allocation2 + $0x1ac] ss:$8 sps:$4 sm:$0xff]   ;;  %v3257_v2 = vld [vmem:[#allocation2 + $0x230] ss:$8 sps:$4 sm:$0xff]  }
 0x2e8   :  { %v1625_v13 = vsel %vm146_vm1, %v2968_v15, 0  ;;  %v2285_v7 = vsel %vm174_vm3, %v2284_v22, %v2276_v41  ;;  %v2510_v54 = vrot.slane %v3979_v14, 2  ;;  %v2514_v43 = vsel %vm749_vm10, %v2500_v16, %v2502_v47  ;;  %v3259_v26 = vld [vmem:[#allocation2 + $0x234] ss:$8 sps:$4 sm:$0xff]   ;;  %v1827_v24 = vld [vmem:[#allocation2 + $0x228] sm:$0xff]  ;;  %v2412_v39 = vld [vmem:[#allocation2 + $0x340] sm:$0xff] }
 0x2e9   :  { %v1343_v46 = vpack.c.bf16 %v1342_v30, %v1342_v30  ;;  %v4199_v33 = vsel %vm759_vm15, %v2285_v7, %v2278_v62  ;;  %v2512_v59 = vrot.slane %v3982_v52, 1  ;;  %v2515_v15 = vsel %vm751_vm11, %v2514_v43, %v2504_v44  ;;  %v3266_v42 = vld [vmem:[#allocation2 + $0x21c] ss:$8 sps:$4 sm:$0xff]   ;;  %v3272_v5 = vld [vmem:[#allocation2 + $0x20c] ss:$8 sps:$4 sm:$0xff]  }
 0x2ea   :  { %1411 = vmatpush1.bf16.msra.mxu1 %v3232_v50  ;;  %1769 = vmatpush1.bf16.msra.mxu0 %v3235_v28  ;;  %v1701_v34 = vpack.c.bf16 %v1700_v4, %v1700_v4  ;;  %v2516_v14 = vsel %vm753_vm12, %v2515_v15, %v2506_v58  ;;  %v2989_v29 = vcombine.high %v1827_v24, %v1827_v24  ;;  %v3264_v50 = vld [vmem:[#allocation2 + $0x218] ss:$8 sps:$4 sm:$0xff]   ;;  %v3278_v36 = vld [vmem:[#allocation2 + $0x1fc] ss:$8 sps:$4 sm:$0xff]   ;;  %v3286_v43 = vld [vmem:[#allocation2 + $0x288] ss:$8 sps:$4 sm:$0xff]  }
 0x2eb   :  { %2970 = vmatprep.subr.msk.bf16.mxu1 %vm146_vm1, %v2969_v18  ;;  %3000 = vmatprep.subr.msk.bf16.mxu0 %vm146_vm1, %v2999_v8  ;;  %v3247_v18 = vld [vmem:[#allocation2 + $0x254] ss:$8 sps:$4 sm:$0xff]   ;;  %v2517_v52 = vsel %vm146_vm1, %v2516_v14, %v2508_v17  ;;  %v3245_v8 = vld [vmem:[#allocation2 + $0x250] ss:$8 sps:$4 sm:$0xff]   ;;  %v3019_v3 = vcombine.high %v2178_v23, %v2178_v23  ;;  %v3018_v20 = vcombine.low %v2178_v23, %v2178_v23  ;;  %v3281_v28 = vld [vmem:[#allocation2 + $0x2a4] ss:$8 sps:$4 sm:$0xff]  }
 0x2ec   :  { %v2518_v0 = vsel %vm756_vm13, %v2517_v52, %v2510_v54  ;;  %v1577_v57 = vpack.c.bf16 %v4055_v37, %v4055_v37  ;;  %v1936_v11 = vpack.c.bf16 %v4070_v49, %v4070_v49  ;;  %v3267_v37 = vld [vmem:[#allocation2 + $0x2c0] ss:$8 sps:$4 sm:$0xff]   ;;  %v3273_v41 = vld [vmem:[#allocation2 + $0x2b0] ss:$8 sps:$4 sm:$0xff]   ;;  %v3039_v44 = vcombine.high %v2412_v39, %v2412_v39  ;;  %v3288_v17 = vld [vmem:[#allocation2 + $0x28c] ss:$8 sps:$4 sm:$0xff]  }
 0x2ed   :  { %2951 = vmatmul.mubr.msk.bf16.vlgmr.msra.gmra.mxu1 %vm835_vm2, %v1343_v46  ;;  %2981 = vmatmul.mubr.msk.bf16.vlgmr.msra.gmra.mxu0 %vm835_vm2, %v1701_v34  ;;  %v2519_v1 = vsel %vm174_vm3, %v2518_v0, %v2512_v59  ;;  %v2218_v63 = vsel %vm146_vm1, %v3018_v20, 0  ;;  %v3270_v49 = vld [vmem:[#allocation2 + $0x208] ss:$8 sps:$4 sm:$0xff]   ;;  %v2061_v62 = vld [vmem:[#allocation2 + $0x298] sm:$0xff]  ;;  %v3038_v4 = vcombine.low %v2412_v39, %v2412_v39  ;;  %v1819_v22 = vpack.c.bf16 %v4102_v60, %v4102_v60  ;;  %v3300_v15 = vld [vmem:[#allocation2 + $0x26c] ss:$8 sps:$4 sm:$0xff]  }
 0x2ee   :  { %1639 = vmatpush1.bf16.msra.mxu1 %v1625_v13  ;;  %1998 = vmatpush1.bf16.msra.mxu0 %v1984_v40  ;;  %v4220_v51 = vsel %vm759_vm15, %v2519_v1, %v3984_v48  ;;  %v2988_v48 = vcombine.low %v1827_v24, %v1827_v24  ;;  %v3276_v47 = vld [vmem:[#allocation2 + $0x1f8] ss:$8 sps:$4 sm:$0xff]   ;;  %v3009_v56 = vcombine.high %v2061_v62, %v2061_v62  ;;  %v3291_v54 = vld [vmem:[#allocation2 + $0x334] ss:$8 sps:$4 sm:$0xff]   ;;  %v2295_v40 = vld [vmem:[#allocation2 + $0x308] sm:$0xff] }
 0x2ef   :  { %1640 = vmatprep.subr.bf16.mxu1 %v3244_v12  ;;  %1999 = vmatprep.subr.bf16.mxu0 %v3247_v18  ;;  %v3279_v30 = vld [vmem:[#allocation2 + $0x2a0] ss:$8 sps:$4 sm:$0xff]   ;;  %v3008_v16 = vcombine.low %v2061_v62, %v2061_v62  ;;  %v2170_v13 = vpack.c.bf16 %v4132_v45, %v4132_v45  ;;  %v2452_v7 = vsel %vm146_vm1, %v3038_v4, 0  ;;  %v3289_v60 = vld [vmem:[#allocation2 + $0x330] ss:$8 sps:$4 sm:$0xff]   ;;  %v3029_v52 = vcombine.high %v2295_v40, %v2295_v40 }
 0x2f0   :  { %1662 = vmatprep.mubr.bf16.mxu1 %v3389_v9  ;;  %2021 = vmatprep.mubr.bf16.mxu0 %v3389_v9  ;;  %v1867_v32 = vsel %vm146_vm1, %v2988_v48, 0  ;;  %v3294_v46 = vld [vmem:[#allocation2 + $0x27c] ss:$8 sps:$4 sm:$0xff]   ;;  %v3292_v45 = vld [vmem:[#allocation2 + $0x278] ss:$8 sps:$4 sm:$0xff]   ;;  %v2053_v0 = vpack.c.bf16 %v4153_v55, %v4153_v55  ;;  %v2404_v1 = vpack.c.bf16 %v4173_v21, %v4173_v21  ;;  %v2287_v23 = vpack.c.bf16 %v4199_v33, %v4199_v33 }
 0x2f1   :  { %v2101_v58 = vsel %vm146_vm1, %v3008_v16, 0  ;;  %v3297_v12 = vld [vmem:[#allocation2 + $0x324] ss:$8 sps:$4 sm:$0xff]   ;;  %v3295_v59 = vld [vmem:[#allocation2 + $0x320] ss:$8 sps:$4 sm:$0xff]   ;;  %v2521_v33 = vpack.c.bf16 %v4220_v51, %v4220_v51 }
 0x2f2   :  { %1641 = vmatpush1.bf16.msra.mxu1 %v3242_v38  ;;  %2000 = vmatpush1.bf16.msra.mxu0 %v3245_v8  ;;  %v3303_v34 = vld [vmem:[#allocation2 + $0x314] ss:$8 sps:$4 sm:$0xff]   ;;  %v3298_v18 = vld [vmem:[#allocation2 + $0x268] ss:$8 sps:$4 sm:$0xff]   ;;  %v3028_v38 = vcombine.low %v2295_v40, %v2295_v40 }
 0x2f3   :  { %1642 = vmatprep.subr.bf16.mxu1 %v3250_v31  ;;  %2001 = vmatprep.subr.bf16.mxu0 %v3253_v53  ;;  %v3301_v14 = vld [vmem:[#allocation2 + $0x310] ss:$8 sps:$4 sm:$0xff]   ;;  %v3308_v31 = vld [vmem:[#allocation2 + $0x2fc] ss:$8 sps:$4 sm:$0xff]   ;;  %v3325_v20 = vld [vmem:[#allocation2 + $0x34c] ss:$8 sps:$4 sm:$0xff]  }
 0x2f4   :  { %v2335_v8 = vsel %vm146_vm1, %v3028_v38, 0  ;;  %v3306_v53 = vld [vmem:[#allocation2 + $0x2f8] ss:$8 sps:$4 sm:$0xff]   ;;  %v3309_v55 = vld [vmem:[#allocation2 + $0x2e8] ss:$8 sps:$4 sm:$0xff]  }
 0x2f5   :  { %v3322_v48 = vld [vmem:[#allocation2 + $0x35c] ss:$8 sps:$4 sm:$0xff]  }
 0x2f6   :  { %1643 = vmatpush1.bf16.msra.mxu1 %v3248_v27  ;;  %2002 = vmatpush1.bf16.msra.mxu0 %v3251_v10  ;;  %v3311_v27 = vld [vmem:[#allocation2 + $0x2ec] ss:$8 sps:$4 sm:$0xff]   ;;  %v3314_v10 = vld [vmem:[#allocation2 + $0x2dc] ss:$8 sps:$4 sm:$0xff]  }
 0x2f7   :  { %1644 = vmatprep.subr.bf16.mxu1 %v3256_v19  ;;  %2003 = vmatprep.subr.bf16.mxu0 %v3259_v26  ;;  %v2529_v19 = vld [vmem:[#allocation2 + $0x378] sm:$0xff] }
 0x2f8   :  { %v3312_v26 = vld [vmem:[#allocation2 + $0x2d8] ss:$8 sps:$4 sm:$0xff]   ;;  %v3049_v21 = vcombine.high %v2529_v19, %v2529_v19  ;;  %v3048_v24 = vcombine.low %v2529_v19, %v2529_v19 }
 0x2fa   :  { %1645 = vmatpush1.bf16.msra.mxu1 %v3254_v61  ;;  %2004 = vmatpush1.bf16.msra.mxu0 %v3257_v2  ;;  %v2569_v61 = vsel %vm146_vm1, %v3048_v24, 0  ;;  %v3319_v2 = vld [vmem:[#allocation2 + $0x36c] ss:$8 sps:$4 sm:$0xff]  }
 0x2fb   :  { %2990 = vmatprep.subr.msk.bf16.mxu1 %vm146_vm1, %v2989_v29  ;;  %3020 = vmatprep.subr.msk.bf16.mxu0 %vm146_vm1, %v3019_v3  ;;  %v3317_v29 = vld [vmem:[#allocation2 + $0x368] ss:$8 sps:$4 sm:$0xff]   ;;  %v3320_v3 = vld [vmem:[#allocation2 + $0x358] ss:$8 sps:$4 sm:$0xff]  }
 0x2fd   :  { %2971 = vmatmul.mubr.msk.bf16.vlgmr.msra.gmra.mxu1 %vm835_vm2, %v1577_v57  ;;  %3001 = vmatmul.mubr.msk.bf16.vlgmr.msra.gmra.mxu0 %vm835_vm2, %v1936_v11  ;;  %v3323_v57 = vld [vmem:[#allocation2 + $0x348] ss:$8 sps:$4 sm:$0xff]  }
 0x2fe   :  { %1881 = vmatpush1.bf16.msra.mxu1 %v1867_v32  ;;  %2232 = vmatpush1.bf16.msra.mxu0 %v2218_v63 }
 0x2ff   :  { %1882 = vmatprep.subr.bf16.mxu1 %v3266_v42  ;;  %2233 = vmatprep.subr.bf16.mxu0 %v3269_v25 }
 0x300   :  { %1904 = vmatprep.mubr.bf16.mxu1 %v3389_v9  ;;  %2255 = vmatprep.mubr.bf16.mxu0 %v3389_v9 }
 0x302   :  { %1883 = vmatpush1.bf16.msra.mxu1 %v3264_v50  ;;  %2234 = vmatpush1.bf16.msra.mxu0 %v3267_v37 }
 0x303   :  { %1884 = vmatprep.subr.bf16.mxu1 %v3272_v5  ;;  %2235 = vmatprep.subr.bf16.mxu0 %v3275_v35 }
 0x306   :  { %1885 = vmatpush1.bf16.msra.mxu1 %v3270_v49  ;;  %2236 = vmatpush1.bf16.msra.mxu0 %v3273_v41 }
 0x307   :  { %1886 = vmatprep.subr.bf16.mxu1 %v3278_v36  ;;  %2237 = vmatprep.subr.bf16.mxu0 %v3281_v28 }
 0x30a   :  { %1887 = vmatpush1.bf16.msra.mxu1 %v3276_v47  ;;  %2238 = vmatpush1.bf16.msra.mxu0 %v3279_v30 }
 0x30b   :  { %3010 = vmatprep.subr.msk.bf16.mxu1 %vm146_vm1, %v3009_v56  ;;  %3040 = vmatprep.subr.msk.bf16.mxu0 %vm146_vm1, %v3039_v44 }
 0x30d   :  { %2991 = vmatmul.mubr.msk.bf16.vlgmr.msra.gmra.mxu1 %vm835_vm2, %v1819_v22  ;;  %3021 = vmatmul.mubr.msk.bf16.vlgmr.msra.gmra.mxu0 %vm835_vm2, %v2170_v13 }
 0x30e   :  { %2115 = vmatpush1.bf16.msra.mxu1 %v2101_v58  ;;  %2466 = vmatpush1.bf16.msra.mxu0 %v2452_v7 }
 0x30f   :  { %2116 = vmatprep.subr.bf16.mxu1 %v3288_v17  ;;  %2467 = vmatprep.subr.bf16.mxu0 %v3291_v54 }
 0x310   :  { %2138 = vmatprep.mubr.bf16.mxu1 %v3389_v9  ;;  %2489 = vmatprep.mubr.bf16.mxu0 %v3389_v9 }
 0x312   :  { %2117 = vmatpush1.bf16.msra.mxu1 %v3286_v43  ;;  %2468 = vmatpush1.bf16.msra.mxu0 %v3289_v60 }
 0x313   :  { %2118 = vmatprep.subr.bf16.mxu1 %v3294_v46  ;;  %2469 = vmatprep.subr.bf16.mxu0 %v3297_v12 }
 0x316   :  { %2119 = vmatpush1.bf16.msra.mxu1 %v3292_v45  ;;  %2470 = vmatpush1.bf16.msra.mxu0 %v3295_v59 }
 0x317   :  { %2120 = vmatprep.subr.bf16.mxu1 %v3300_v15  ;;  %2471 = vmatprep.subr.bf16.mxu0 %v3303_v34 }
 0x31a   :  { %2121 = vmatpush1.bf16.msra.mxu1 %v3298_v18  ;;  %2472 = vmatpush1.bf16.msra.mxu0 %v3301_v14 }
 0x31b   :  { %3030 = vmatprep.subr.msk.bf16.mxu1 %vm146_vm1, %v3029_v52  ;;  %2794 = vmatprep.subr.bf16.mxu0 %v3389_v9 }
 0x31d   :  { %3011 = vmatmul.mubr.msk.bf16.vlgmr.msra.gmra.mxu1 %vm835_vm2, %v2053_v0  ;;  %3041 = vmatmul.mubr.msk.bf16.vlgmr.msra.gmra.mxu0 %vm835_vm2, %v2404_v1  ;;  %v3326_v1 = vld [vmem:[%s4344_s9 + $0x38] sm:$0xff]  }
 0x31e   :  { %2349 = vmatpush1.bf16.msra.mxu1 %v2335_v8  ;;  %2372 = vmatprep.mubr.bf16.mxu1 %v3389_v9 }
 0x31f   :  { %2350 = vmatprep.subr.bf16.mxu1 %v3308_v31  ;;  %2795 = vmatpush1.bf16.msra.mxu0 %v3326_v1 }
 0x320   :  { %2796 = vmatprep.subr.bf16.mxu0 %v3389_v9 }
 0x322   :  { %2351 = vmatpush1.bf16.msra.mxu1 %v3306_v53  ;;  %v3327_v53 = vld [vmem:[%s4344_s9 + $0x30] sm:$0xff]  }
 0x323   :  { %2352 = vmatprep.subr.bf16.mxu1 %v3311_v27  ;;  %2797 = vmatpush1.bf16.msra.mxu0 %v3327_v53  ;;  %v3328_v27 = vld [vmem:[%s4344_s9 + $0x28] sm:$0xff]  }
 0x324   :  { %2798 = vmatprep.subr.bf16.mxu0 %v3389_v9 }
 0x326   :  { %2353 = vmatpush1.bf16.msra.mxu1 %v3309_v55 }
 0x327   :  { %2354 = vmatprep.subr.bf16.mxu1 %v3314_v10  ;;  %2799 = vmatpush1.bf16.msra.mxu0 %v3328_v27 }
 0x328   :  { %2800 = vmatprep.subr.bf16.mxu0 %v3389_v9 }
 0x32a   :  { %2355 = vmatpush1.bf16.msra.mxu1 %v3312_v26  ;;  %v3329_v26 = vld [vmem:[%s4344_s9 + $0x20] sm:$0xff]  }
 0x32b   :  { %3050 = vmatprep.subr.msk.bf16.mxu1 %vm146_vm1, %v3049_v21  ;;  %2801 = vmatpush1.bf16.msra.mxu0 %v3329_v26  ;;  %vm2639_vm1 = vcmask 179200  }
 0x32c   :  { %2802 = vmatprep.subr.bf16.mxu0 %v3389_v9 }
 0x32d   :  { %3031 = vmatmul.mubr.msk.bf16.vlgmr.msra.gmra.mxu1 %vm835_vm2, %v2287_v23 }
 0x32e   :  { %2583 = vmatpush1.bf16.msra.mxu1 %v2569_v61  ;;  %2606 = vmatprep.mubr.bf16.mxu1 %v3389_v9 }
 0x32f   :  { %2584 = vmatprep.subr.bf16.mxu1 %v3319_v2 }
 0x332   :  { %2585 = vmatpush1.bf16.msra.mxu1 %v3317_v29 }
 0x333   :  { %2586 = vmatprep.subr.bf16.mxu1 %v3322_v48 }
 0x336   :  { %2587 = vmatpush1.bf16.msra.mxu1 %v3320_v3  ;;  %v3330_v3 = vld [vmem:[%s4344_s9 + $0x18] sm:$0xff]  }
 0x337   :  { %2588 = vmatprep.subr.bf16.mxu1 %v3325_v20  ;;  %2803 = vmatpush1.bf16.msra.mxu0 %v3330_v3 }
 0x338   :  { %2804 = vmatprep.subr.bf16.mxu0 %v3389_v9 }
 0x33a   :  { %2589 = vmatpush1.bf16.msra.mxu1 %v3323_v57 }
 0x33d   :  { %3051 = vmatmul.mubr.msk.bf16.vlgmr.msra.gmra.mxu1 %vm835_vm2, %v2521_v33  ;;  %v3331_v33 = vld [vmem:[%s4344_s9 + $0x10] sm:$0xff]  }
 0x33e   :  { %2805 = vmatpush1.bf16.msra.mxu0 %v3331_v33 }
 0x33f   :  { %2806 = vmatprep.subr.bf16.mxu0 %v3389_v9 }
 0x37d   :  { %v879_v32 = vpop.f32.mrf.mxu1  ;;  %v1079_v42 = vpop.f32.mrf.mxu0 }
 0x37f   :  { %v881_v11 = vpop.f32.mrf.mxu1  ;;  %v1081_v63 = vpop.f32.mrf.mxu0 }
 0x381   :  { %v883_v25 = vpop.f32.mrf.mxu1  ;;  %v1083_v50 = vpop.f32.mrf.mxu0 }
 0x382   :  { %v3334_v50 = vld [vmem:[%s4344_s9 + $0x48] ss:$0 sps:$4 sm:$0x77]  }
 0x383   :  { %v884_v37 = vpop.f32.mrf.mxu1  ;;  %v1084_v5 = vpop.f32.mrf.mxu0 }
 0x38d   :  { %v964_v35 = vpop.f32.mrf.mxu1  ;;  %v1313_v41 = vpop.f32.mrf.mxu0 }
 0x38e   :  { %v965_v49 = vadd.f32 %v964_v35, %v879_v32  ;;  %v3332_v32 = vld [vmem:[%s4344_s9 + $0x8] sm:$0xff]  }
 0x38f   :  { %v966_v36 = vpop.f32.mrf.mxu1  ;;  %v1315_v62 = vpop.f32.mrf.mxu0  ;;  %2807 = vmatpush1.bf16.msra.mxu0 %v3332_v32 }
 0x390   :  { %v967_v28 = vadd.f32 %v966_v36, %v881_v11  ;;  %v1086_v39 = vadd.f32 %v1079_v42, %v965_v49  ;;  %2808 = vmatprep.subr.bf16.mxu0 %v3389_v9 }
 0x391   :  { %v968_v47 = vpop.f32.mrf.mxu1  ;;  %v1317_v30 = vpop.f32.mrf.mxu0 }
 0x392   :  { %v1087_v51 = vadd.f32 %v1081_v63, %v967_v28  ;;  %v3333_v63 = vld [vmem:[%s4344_s9] sm:$0xff]  }
 0x393   :  { %v969_v56 = vpop.f32.mrf.mxu1  ;;  %v1318_v16 = vpop.f32.mrf.mxu0  ;;  %2809 = vmatpush1.bf16.msra.mxu0 %v3333_v63  ;;  %v3335_v28 = vld [vmem:[%s4344_s9 + $0x40] sm:$0xff]  }
 0x394   :  { %2822 = vmatprep.subr.bf16.mxu0 %v3389_v9 }
 0x39d   :  { %v1196_v44 = vpop.f32.mrf.mxu1  ;;  %v1547_v22 = vpop.f32.mrf.mxu0 }
 0x39e   :  { %v1203_v4 = vadd.f32 %v1196_v44, %v1086_v39 }
 0x39f   :  { %v1198_v58 = vpop.f32.mrf.mxu1  ;;  %v1549_v13 = vpop.f32.mrf.mxu0 }
 0x3a0   :  { %v1204_v17 = vadd.f32 %v1198_v58, %v1087_v51  ;;  %v1320_v7 = vadd.f32 %v1313_v41, %v1203_v4  ;;  %v2792_v41 = vsel %vm753_vm12, %v3334_v50, 0 }
 0x3a1   :  { %v1200_v54 = vpop.f32.mrf.mxu1  ;;  %v1551_v43 = vpop.f32.mrf.mxu0  ;;  %2823 = vmatpush2.bf16.msra.mxu0 %v2792_v41 }
 0x3a2   :  { %v1321_v60 = vadd.f32 %v1315_v62, %v1204_v17  ;;  %2824 = vmatprep.subr.bf16.mxu0 %v3389_v9  ;;  %v2620_v9 = vshrl.u32 %v371_v6, 7 }
 0x3a3   :  { %v1201_v46 = vpop.f32.mrf.mxu1  ;;  %v1552_v12 = vpop.f32.mrf.mxu0 }
 0x3a5   :  { %2825 = vmatpush2.bf16.msra.mxu0 %v3335_v28 }
 0x3ad   :  { %v1430_v45 = vpop.f32.mrf.mxu1  ;;  %v1788_v15 = vpop.f32.mrf.mxu0 }
 0x3ae   :  { %v1437_v59 = vadd.f32 %v1430_v45, %v1320_v7 }
 0x3af   :  { %v1432_v34 = vpop.f32.mrf.mxu1  ;;  %v1790_v18 = vpop.f32.mrf.mxu0 }
 0x3b0   :  { %v1438_v40 = vadd.f32 %v1432_v34, %v1321_v60  ;;  %v1554_v14 = vadd.f32 %v1547_v22, %v1437_v59  ;;  %v2617_v34 = vld [vmem:[%s4341_s6] sm:$0x3] }
 0x3b1   :  { %v1434_v52 = vpop.f32.mrf.mxu1  ;;  %v1792_v38 = vpop.f32.mrf.mxu0 }
 0x3b2   :  { %v1555_v0 = vadd.f32 %v1549_v13, %v1438_v40 }
 0x3b3   :  { %v1435_v8 = vpop.f32.mrf.mxu1  ;;  %v1793_v31 = vpop.f32.mrf.mxu0 }
 0x3bd   :  { %v1664_v55 = vpop.f32.mrf.mxu1  ;;  %v2023_v19 = vpop.f32.mrf.mxu0 }
 0x3be   :  { %v1671_v10 = vadd.f32 %v1664_v55, %v1554_v14 }
 0x3bf   :  { %v1666_v21 = vpop.f32.mrf.mxu1  ;;  %v2025_v23 = vpop.f32.mrf.mxu0 }
 0x3c0   :  { %v1672_v24 = vadd.f32 %v1666_v21, %v1555_v0  ;;  %v1795_v61 = vadd.f32 %v1788_v15, %v1671_v10  ;;  %v4307_v15 = vsub.s32 0, %v2620_v9 }
 0x3c1   :  { %v1668_v2 = vpop.f32.mrf.mxu1  ;;  %v2027_v29 = vpop.f32.mrf.mxu0 }
 0x3c2   :  { %v1796_v48 = vadd.f32 %v1790_v18, %v1672_v24  ;;  %v4312_v18 = vsub.s32 1, %v2620_v9  ;;  %v2622_v52 = vrot.slane %v2617_v34, %v4307_v15 }
 0x3c3   :  { %v1669_v20 = vpop.f32.mrf.mxu1  ;;  %v2028_v57 = vpop.f32.mrf.mxu0 }
 0x3c4   :  { %v2626_v6 = vrot.slane %v2617_v34, %v4312_v18 }
 0x3cd   :  { %v1906_v42 = vpop.f32.mrf.mxu1  ;;  %v2257_v11 = vpop.f32.mrf.mxu0 }
 0x3ce   :  { %v1913_v4 = vadd.f32 %v1906_v42, %v1795_v61 }
 0x3cf   :  { %v1908_v25 = vpop.f32.mrf.mxu1  ;;  %v2259_v37 = vpop.f32.mrf.mxu0 }
 0x3d0   :  { %v1914_v58 = vadd.f32 %v1908_v25, %v1796_v48  ;;  %v2030_v13 = vadd.f32 %v2023_v19, %v1913_v4 }
 0x3d1   :  { %v1910_v5 = vpop.f32.mrf.mxu1  ;;  %v2261_v35 = vpop.f32.mrf.mxu0 }
 0x3d2   :  { %v2031_v43 = vadd.f32 %v2025_v23, %v1914_v58 }
 0x3d3   :  { %v1911_v49 = vpop.f32.mrf.mxu1  ;;  %v2262_v36 = vpop.f32.mrf.mxu0 }
 0x3dd   :  { %v2140_v62 = vpop.f32.mrf.mxu1  ;;  %v2491_v39 = vpop.f32.mrf.mxu0 }
 0x3de   :  { %v2147_v54 = vadd.f32 %v2140_v62, %v2030_v13  ;;  %v2675_v13 = vld [vmem:[%s4342_s7] sm:$0x3] }
 0x3df   :  { %v2142_v47 = vpop.f32.mrf.mxu1  ;;  %v2493_v30 = vpop.f32.mrf.mxu0 }
 0x3e0   :  { %v2148_v46 = vadd.f32 %v2142_v47, %v2031_v43  ;;  %v2264_v12 = vadd.f32 %v2257_v11, %v2147_v54  ;;  %v2680_v54 = vrot.slane %v2675_v13, %v4307_v15 }
 0x3e1   :  { %v2144_v51 = vpop.f32.mrf.mxu1  ;;  %v2495_v56 = vpop.f32.mrf.mxu0 }
 0x3e2   :  { %v2265_v59 = vadd.f32 %v2259_v37, %v2148_v46  ;;  %v2684_v46 = vrot.slane %v2675_v13, %v4312_v18 }
 0x3e3   :  { %v2145_v16 = vpop.f32.mrf.mxu1  ;;  %v2496_v44 = vpop.f32.mrf.mxu0 }
 0x3ed   :  { %v2374_v22 = vpop.f32.mrf.mxu1 }
 0x3ee   :  { %v2381_v45 = vadd.f32 %v2374_v22, %v2264_v12 }
 0x3ef   :  { %v2376_v17 = vpop.f32.mrf.mxu1 }
 0x3f0   :  { %v2382_v40 = vadd.f32 %v2376_v17, %v2265_v59  ;;  %v2498_v14 = vadd.f32 %v2491_v39, %v2381_v45 }
 0x3f1   :  { %v2378_v7 = vpop.f32.mrf.mxu1 }
 0x3f2   :  { %v2499_v8 = vadd.f32 %v2493_v30, %v2382_v40 }
 0x3f3   :  { %v2379_v60 = vpop.f32.mrf.mxu1 }
 0x3f4   :  { %v2689_v60 = vld [vmem:[%s4343_s8] sm:$0x3]  ;;  %s3392_s8 = smov [#allocation5]  }
 0x3f5   :  { %v2694_v45 = vrot.slane %v2689_v60, %v4307_v15  ;;  %v2698_v34 = vrot.slane %v2689_v60, %v4312_v18  ;;  %s2841_s3 = sshll.u32 %s3392_s8, 4  ;;  %s2842_s3 = int_to_ptr.vmem [resolvable:$true] %s2841_s3 }
 0x3f6   :  { %s3360_s21 = scalar_lea.vmem %s2842_s3, 128  ;;  %p3365_p6 = scmp.lt.s32.totalorder %s2842_s3, %s2842_s3 }
 0x3f7   :  { %p3361_p5 = scmp.ne.s32.totalorder %s2842_s3, %s3360_s21  ;;  %p3366_p7 = scmp.lt.s32.totalorder %s3360_s21, %s3360_s21 }
 0x3f9   :  { %p3367_p8 = por %p3366_p7, %p3365_p6 }
 0x3fb   :  { %p3368_p9 = pnand %p3367_p8, %p3361_p5 }
 0x3fd   :  { %v2608_v38 = vpop.f32.mrf.mxu1 }
 0x3fe   :  { %v2615_v0 = vadd.f32 %v2608_v38, %v2498_v14 }
 0x3ff   :  { %v2610_v31 = vpop.f32.mrf.mxu1 }
 0x400   :  { %v2629_v1 = vadd.f32 %v2622_v52, %v2615_v0  ;;  %v2616_v53 = vadd.f32 %v2610_v31, %v2499_v8  ;;  %v3052_v8 = vld [vmem:[%s4345_s10] ss:$0 sm:$0xff] }
 0x401   :  { %v2612_v27 = vpop.f32.mrf.mxu1 }
 0x402   :  { %v2631_v55 = vmax.f32 %v2629_v1, 0.0  ;;  %v2630_v10 = vadd.f32 %v2626_v6, %v2616_v53 }
 0x403   :  { %v2613_v19 = vpop.f32.mrf.mxu1 }
 0x404   :  { %v2633_v26 = vrot.slane %v2631_v55, 4  ;;  %v2632_v21 = vmax.f32 %v2630_v10, 0.0 }
 0x406   :  { %v2634_v24 = vadd.f32 %v2633_v26, %v2631_v55  ;;  %v2640_v23 = vsel %vm2639_vm1, %v2632_v21, 0.0 }
 0x407   :  { %v2641_v61 = vrot.slane %v2640_v23, 4 }
 0x408   :  { %v2635_v2 = vrot.slane %v2634_v24, 2 }
 0x409   :  { %v2642_v29 = vadd.f32 %v2641_v61, %v2640_v23 }
 0x40a   :  { %v2636_v48 = vadd.f32 %v2635_v2, %v2634_v24 }
 0x40b   :  { %v2643_v3 = vrot.slane %v2642_v29, 2 }
 0x40c   :  { %v2637_v20 = vrot.slane %v2636_v48, 1 }
 0x40d   :  { %v2644_v57 = vadd.f32 %v2643_v3, %v2642_v29 }
 0x40e   :  { %v2638_v33 = vadd.f32 %v2637_v20, %v2636_v48 }
 0x40f   :  { %v2645_v32 = vrot.slane %v2644_v57, 1 }
 0x410   :  { %v2648_v42 = vmul.f32 0.125, %v2638_v33 }
 0x411   :  { %v2646_v11 = vadd.f32 %v2645_v32, %v2644_v57 }
 0x412   :  { %v2650_v63 = vsub.f32 %v2631_v55, %v2648_v42 }
 0x413   :  { %v2649_v25 = vmul.f32 0.125, %v2646_v11 }
 0x414   :  { %v2652_v50 = vmul.f32 %v2650_v63, %v2650_v63 }
 0x415   :  { %v2651_v37 = vsub.f32 %v2632_v21, %v2649_v25 }
 0x416   :  { %v2654_v5 = vrot.slane %v2652_v50, 4 }
 0x417   :  { %v2653_v35 = vmul.f32 %v2651_v37, %v2651_v37 }
 0x418   :  { %v2655_v49 = vadd.f32 %v2654_v5, %v2652_v50 }
 0x419   :  { %v2660_v41 = vsel %vm2639_vm1, %v2653_v35, 0.0 }
 0x41a   :  { %v2656_v36 = vrot.slane %v2655_v49, 2  ;;  %v2661_v28 = vrot.slane %v2660_v41, 4 }
 0x41c   :  { %v2657_v62 = vadd.f32 %v2656_v36, %v2655_v49  ;;  %v2662_v39 = vadd.f32 %v2661_v28, %v2660_v41 }
 0x41e   :  { %v2658_v47 = vrot.slane %v2657_v62, 1  ;;  %v2663_v30 = vrot.slane %v2662_v39, 2 }
 0x420   :  { %v2659_v51 = vadd.f32 %v2658_v47, %v2657_v62  ;;  %v2664_v56 = vadd.f32 %v2663_v30, %v2662_v39 }
 0x422   :  { %v2667_v16 = vmul.f32 0.125, %v2659_v51  ;;  %v2665_v44 = vrot.slane %v2664_v56, 1 }
 0x424   :  { %v2669_v4 = vadd.f32 1e-05, %v2667_v16  ;;  %v2666_v22 = vadd.f32 %v2665_v44, %v2664_v56 }
 0x426   :  { %3336 = vrsqrt.f32 %v2669_v4  ;;  %v2668_v58 = vmul.f32 0.125, %v2666_v22 }
 0x428   :  { %v2670_v17 = vadd.f32 1e-05, %v2668_v58 }
 0x42a   :  { %3338 = vrsqrt.f32 %v2670_v17 }
 0x433   :  { %v3337_v7 = vpop.eup %3336 }
 0x434   :  { %v2673_v43 = vmul.f32 %v3337_v7, %v2650_v63 }
 0x436   :  { %v2687_v12 = vmul.f32 %v2680_v54, %v2673_v43 }
 0x437   :  { %v3339_v9 = vpop.eup %3338 }
 0x438   :  { %v2674_v59 = vmul.f32 %v3339_v9, %v2651_v37  ;;  %v2701_v14 = vadd.f32 %v2694_v45, %v2687_v12 }
 0x43a   :  { %v2688_v40 = vmul.f32 %v2684_v46, %v2674_v59  ;;  %v2703_v0 = vpack.c.bf16 %v2701_v14, %v2701_v14 }
 0x43c   :  { %v2702_v52 = vadd.f32 %v2698_v34, %v2688_v40 }
 0x43e   :  { %v2704_v38 = vpack.c.bf16 %v2702_v52, %v2702_v52 }
 0x440   :  { %3063 = vmatprep.mubr.msk.bf16.mxu0 %vm2639_vm1, %v2704_v38 }
 0x441   :  { %2827 = vmatmul.mubr.bf16.vlgmr.msra.gmra.mxu0 %v2703_v0 }
 0x501   :  { %v2828_v6 = vpop.f32.mrf.mxu0 }
 0x502   :  { %v2829_v31 = vadd.f32 %v3052_v8, %v2828_v6 }
 0x503   :  { %v2830_v15 = vpop.f32.mrf.mxu0 }
 0x504   :  { %2834 = vst [vmem:[#allocation5] sm:$0xff] %v2829_v31 }
 0x505   :  { %v2831_v18 = vpop.f32.mrf.mxu0 }
 0x506   :  { %3371 = shalt.err (!%p3368_p9)
}
 0x507   :  { %2844 = dma.vmem_to_hbm [thread:$0]  %s2842_s3, 128, %s4346_s11, [#allocation4]   ;;  %v2832_v1 = vpop.f32.mrf.mxu0 }
 0x508   :  { %3382 = dma.done.wait [#allocation4], 128  }
 0x509   :  { %3383 = vsyncadd [#allocation4], 4294967168 }
 0x50a   :  { %2848 = vsyncpa [#allocation3], 1 }
 0x50b   :  { %2849 = vsyncpa [#allocation4], 1 }

</bundles_post_ra>
